<compile_context>
chip_gen: v7x
topology: tpu7x:2x2x1
jax: 0.10.0
libtpu: 0.0.40
codegen_flags: <defaults>
</compile_context>

<pallas_src>
import functools
import numpy as np
import jax
import jax.numpy as jnp
from jax.experimental import pallas as pl
from jax.experimental.pallas import tpu as pltpu


# ----------------------------------------------------------------------------- kernel
def _window_attn_kernel(x_ref, wqkv_ref, bqkv_ref, wp_ref, bp_ref, bm_ref, o_ref, *,
                        num_heads, head_dim, wb, n_tok, channels):
    """One grid step == WB windows (T = WB*N token rows).

    x_ref    : (T, C)          bf16 tokens for this block of windows
    wqkv_ref : (C, 3C)         bf16 fused qkv weight (scale folded into q columns)
    bqkv_ref : (1, 3C)         f32 fused qkv bias (scale folded into q part)
    wp_ref   : (C, C)          bf16 output projection weight (already transposed)
    bp_ref   : (1, C)          f32 output projection bias
    bm_ref   : (H, WB|1, N, N) f32 rel-pos bias (+ additive mask), resident in VMEM
    o_ref    : (T, C)          output
    """
    x = x_ref[...]                                                   # (T, C) bf16

    # Fused lane-dense QKV projection on the MXU, f32 accumulation, then one bf16 cast.
    qkv = jnp.dot(x, wqkv_ref[...], preferred_element_type=jnp.float32) + bqkv_ref[...]
    qkv = qkv.astype(x.dtype)                                        # (T, 3C) bf16

    ctx_parts = []
    # Small static head loop: the big matmuls are hoisted out, only the attention core
    # (narrow activation slices + batched N x N einsums) remains per head.
    for h in range(num_heads):
        lo = h * head_dim
        hi = lo + head_dim
        q = qkv[:, lo:hi].reshape(wb, n_tok, head_dim)
        k = qkv[:, channels + lo:channels + hi].reshape(wb, n_tok, head_dim)
        v = qkv[:, 2 * channels + lo:2 * channels + hi].reshape(wb, n_tok, head_dim)

        # Batched (over WB windows) attention scores, f32 accumulation.
        s = jnp.einsum('wqd,wkd->wqk', q, k,
                       preferred_element_type=jnp.float32)           # (WB, N, N)
        s = s + bm_ref[h]                                            # bias (+ mask), one add

        # softmax over keys (f32) with deferred normalization.
        m = jnp.max(s, axis=-1, keepdims=True)
        e = jnp.exp(s - m)                                           # (WB, N, N) f32
        l = jnp.sum(e, axis=-1, keepdims=True)                       # (WB, N, 1)  f32
        ctx = jnp.einsum('wqk,wkd->wqd', e.astype(x.dtype), v,
                         preferred_element_type=jnp.float32)         # (WB, N, Dh) unnormalized
        ctx = ctx * pl.reciprocal(l, approx=True)                    # normalize on the small tensor
        ctx_parts.append(ctx.reshape(wb * n_tok, head_dim).astype(x.dtype))

    # Stack heads along lanes (channel = h*Dh + d, matching torch layout) and run ONE
    # full-depth (T, C) @ (C, C) output projection on the MXU.
    ctx_all = jnp.concatenate(ctx_parts, axis=-1)                    # (T, C) bf16
    out = jnp.dot(ctx_all, wp_ref[...], preferred_element_type=jnp.float32) + bp_ref[...]
    o_ref[...] = out.astype(o_ref.dtype)


# ----------------------------------------------------------------------------- wrapper
def _choose_wb(B_, N, nW, target_rows=512):
    """Pick windows-per-step: a multiple of nW (so the tiled mask lines up with b % nW),
    dividing B_, with WB*N a sublane multiple (or the full array).  Prefer grid_len >= 2
    so both v7x TensorCores get work; grow toward ~target_rows rows per step."""
    step = max(1, nW)
    cands = [wb for wb in range(step, B_ + 1, step)
             if B_ % wb == 0 and ((wb * N) % 8 == 0 or wb == B_)]
    if not cands:
        cands = [B_]
    multi = [wb for wb in cands if B_ // wb >= 2]
    pool = multi if multi else cands
    for wb in pool:                       # ascending: smallest that reaches target_rows
        if wb * N >= target_rows:
            return wb
    return pool[-1]                       # largest available (still grid>=2 if possible)


def _const_spec(arr):
    """Whole-array block with a constant index_map -> DMA'd once, resident in VMEM."""
    zeros = (0,) * arr.ndim
    return pl.BlockSpec(arr.shape, lambda s, _z=zeros: _z)


def window_attention(x, w_qkv, b_qkv, w_proj, b_proj, rel_bias, *, num_heads, scale,
                     mask=None, out_dtype=None):
    """x: (B_, N, C); w_qkv: (3C, C); b_qkv: (3C,); w_proj: (C, C); b_proj: (C,);
    rel_bias: (H, N, N); mask: (nW, N, N) additive (0 / -inf-like) or None."""
    B_, N, C = x.shape
    H = num_heads
    Dh = C // H
    nW = 1 if mask is None else mask.shape[0]
    if mask is not None:
        assert B_ % nW == 0, "num_windows must divide B_"
    WB = _choose_wb(B_, N, nW)
    grid_len = B_ // WB
    T = WB * N

    f32 = jnp.float32
    cdt = jnp.bfloat16
    out_dt = x.dtype if out_dtype is None else out_dtype

    # --- one-time weight re-layout (torch Linear convention (out, in)) ------------------
    # Fused lane-dense qkv weight (C, 3C) with the qk scale folded into the q columns.
    wqkv_s = jnp.concatenate([w_qkv[:C] * scale, w_qkv[C:]], axis=0)      # (3C, C)
    wqkv_k = wqkv_s.T.astype(cdt)                                         # (C, 3C)
    bqkv_k = jnp.concatenate([b_qkv[:C] * scale, b_qkv[C:]],
                             axis=0).reshape(1, 3 * C).astype(f32)        # (1, 3C)
    # Output projection, lane-dense: out = ctx @ w_proj.T + b_proj
    wp_k = w_proj.T.astype(cdt)                                           # (C, C)
    bp_k = b_proj.reshape(1, C).astype(f32)                               # (1, C)

    x2 = x.reshape(B_ * N, C).astype(cdt)

    # Precombined rel-pos bias + shifted-window mask, resident in VMEM.
    rel_bias = rel_bias.astype(f32)                                       # (H, N, N)
    if mask is None:
        bm = rel_bias[:, None, :, :]                                      # (H, 1, N, N)
    else:
        # Windows in a block are b_ = s*WB + w, and WB % nW == 0 => b_ % nW == w % nW.
        mask_wb = jnp.tile(mask.astype(f32), (WB // nW, 1, 1))            # (WB, N, N)
        bm = rel_bias[:, None, :, :] + mask_wb[None, :, :, :]             # (H, WB, N, N)

    kernel = functools.partial(_window_attn_kernel, num_heads=H, head_dim=Dh,
                               wb=WB, n_tok=N, channels=C)

    # VMEM budget: resident slabs + double-buffered x/out tiles + slack, clamped to the
    # v7x physical 64 MiB ceiling (v5e/v6e have 128 MiB so this is always safe).
    def _nbytes(a):
        return int(a.size) * int(np.dtype(a.dtype).itemsize)
    resident = sum(_nbytes(a) for a in (wqkv_k, bqkv_k, wp_k, bp_k, bm))
    tiles = 2 * (T * C * 2 + T * C * int(np.dtype(out_dt).itemsize))
    vmem_limit = int(min(max(resident + tiles + (8 << 20), 32 << 20), 64 << 20))

    out2 = pl.pallas_call(
        kernel,
        out_shape=jax.ShapeDtypeStruct((B_ * N, C), out_dt),
        grid_spec=pltpu.PrefetchScalarGridSpec(
            num_scalar_prefetch=0,
            grid=(grid_len,),
            in_specs=[
                pl.BlockSpec((T, C), lambda s: (s, 0)),   # x rows for this window block
                _const_spec(wqkv_k), _const_spec(bqkv_k),
                _const_spec(wp_k), _const_spec(bp_k),
                _const_spec(bm),
            ],
            out_specs=pl.BlockSpec((T, C), lambda s: (s, 0)),
        ),
        compiler_params=pltpu.CompilerParams(
            dimension_semantics=("parallel",),
            vmem_limit_bytes=vmem_limit),
    )(x2, wqkv_k, bqkv_k, wp_k, bp_k, bm)

    return out2.reshape(B_, N, C)


# ----------------------------------------------------------------------------- glue
def relative_position_index(window_size):
    Wh, Ww = window_size
    coords = np.stack(np.meshgrid(np.arange(Wh), np.arange(Ww), indexing="ij"))  # (2,Wh,Ww)
    coords_flatten = coords.reshape(2, -1)                                       # (2, N)
    rel = coords_flatten[:, :, None] - coords_flatten[:, None, :]                # (2, N, N)
    rel = rel.transpose(1, 2, 0).copy()
    rel[:, :, 0] += Wh - 1
    rel[:, :, 1] += Ww - 1
    rel[:, :, 0] *= 2 * Ww - 1
    return rel.sum(-1)                                                           # (N, N)


def ref_forward(x, w_qkv, b_qkv, w_proj, b_proj, rel_bias, *, num_heads, scale, mask=None):
    """Pure-JAX reference mirroring the PyTorch forward exactly (f32 math)."""
    B_, N, C = x.shape
    H = num_heads
    Dh = C // H
    qkv = x @ w_qkv.T + b_qkv
    qkv = qkv.reshape(B_, N, 3, H, Dh).transpose(2, 0, 3, 1, 4)
    q, k, v = qkv[0], qkv[1], qkv[2]
    q = q * scale
    attn = q @ jnp.swapaxes(k, -2, -1)
    attn = attn + rel_bias[None]
    if mask is not None:
        nW = mask.shape[0]
        attn = attn.reshape(B_ // nW, nW, H, N, N) + mask[None, :, None]
        attn = attn.reshape(-1, H, N, N)
    attn = jax.nn.softmax(attn, axis=-1)
    out = jnp.swapaxes(attn @ v, 1, 2).reshape(B_, N, C)
    return out @ w_proj.T + b_proj


if __name__ == "__main__":
    # Small, module-consistent shapes.
    dim = 32
    window_size = (4, 4)
    num_heads = 4
    Wh, Ww = window_size
    N = Wh * Ww                 # 16 tokens per window
    nW = 4                      # windows per image
    B = 2                       # batch
    B_ = B * nW                 # 8
    head_dim = dim // num_heads
    scale = head_dim ** (-0.5)

    key = jax.random.PRNGKey(0)
    k_x, k_tab, k_wqkv, k_bqkv, k_wproj, k_bproj, k_mask = jax.random.split(key, 7)

    # Deterministic synthetic parameters (torch.nn.Linear convention: (out, in)).
    x = jax.random.normal(k_x, (B_, N, dim), jnp.float32)
    table = 0.02 * jax.random.normal(
        k_tab, ((2 * Wh - 1) * (2 * Ww - 1), num_heads), jnp.float32)  # trunc_normal std=0.02
    w_qkv = 0.1 * jax.random.normal(k_wqkv, (3 * dim, dim), jnp.float32)
    b_qkv = 0.1 * jax.random.normal(k_bqkv, (3 * dim,), jnp.float32)
    w_proj = 0.1 * jax.random.normal(k_wproj, (dim, dim), jnp.float32)
    b_proj = 0.1 * jax.random.normal(k_bproj, (dim,), jnp.float32)

    # relative position bias: table gather -> (H, N, N)   (cheap glue, done once)
    rpi = jnp.asarray(relative_position_index(window_size))                    # (N, N)
    rel_bias = table[rpi.reshape(-1)].reshape(N, N, num_heads).transpose(2, 0, 1)

    # Shifted-window style additive mask (large negative like Swin's -100).
    mask = jnp.where(jax.random.bernoulli(k_mask, 0.2, (nW, N, N)), -1e4, 0.0).astype(jnp.float32)

    # --- no-mask path ---
    out0 = window_attention(x, w_qkv, b_qkv, w_proj, b_proj, rel_bias,
                            num_heads=num_heads, scale=scale, mask=None)
    jax.block_until_ready(out0)

    # --- masked path ---
    out1 = window_attention(x, w_qkv, b_qkv, w_proj, b_proj, rel_bias,
                            num_heads=num_heads, scale=scale, mask=mask)
    jax.block_until_ready(out1)

    # Reference with inputs rounded to bf16 (kernel computes bf16 x/weights with f32
    # accumulation), compared with a tolerance covering the remaining bf16 intermediates
    # and the EUP approx reciprocal in the softmax denominator.
    c = lambda a: a.astype(jnp.bfloat16).astype(jnp.float32)
    ref0 = ref_forward(c(x), c(w_qkv), b_qkv, c(w_proj), b_proj, rel_bias,
                       num_heads=num_heads, scale=scale, mask=None)
    ref1 = ref_forward(c(x), c(w_qkv), b_qkv, c(w_proj), b_proj, rel_bias,
                       num_heads=num_heads, scale=scale, mask=mask)

    assert jnp.allclose(out0, ref0, rtol=3e-2, atol=3e-2), "mismatch (no mask)"
    assert jnp.allclose(out1, ref1, rtol=3e-2, atol=3e-2), "mismatch (mask)"
    print("KERNEL_OK")
</pallas_src>

<mosaic_0001>
module attributes {stable_mosaic.version = 11 : i64} {
  func.func @_window_attn_kernel(%arg0: i32, %arg1: memref<64x32xbf16, #tpu.memory_space<vmem>>, %arg2: memref<32x96xbf16, #tpu.memory_space<vmem>>, %arg3: memref<1x96xf32, #tpu.memory_space<vmem>>, %arg4: memref<32x32xbf16, #tpu.memory_space<vmem>>, %arg5: memref<1x32xf32, #tpu.memory_space<vmem>>, %arg6: memref<4x1x16x16xf32, #tpu.memory_space<vmem>>, %arg7: memref<64x32xf32, #tpu.memory_space<vmem>>) attributes {dimension_semantics = [#tpu.dimension_semantics<parallel>], iteration_bounds = array<i64: 2>, scalar_prefetch = 0 : i64, scratch_operands = 0 : i64, tpu.core_type = #tpu.core_type<tc>, window_params = [{transform_indices = @transform_0, window_bounds = array<i64: 64, 32>}, {pipeline_mode = #tpu.pipeline_mode<synchronous>, transform_indices = @transform_1, window_bounds = array<i64: 32, 96>}, {pipeline_mode = #tpu.pipeline_mode<synchronous>, transform_indices = @transform_2, window_bounds = array<i64: 1, 96>}, {pipeline_mode = #tpu.pipeline_mode<synchronous>, transform_indices = @transform_3, window_bounds = array<i64: 32, 32>}, {pipeline_mode = #tpu.pipeline_mode<synchronous>, transform_indices = @transform_4, window_bounds = array<i64: 1, 32>}, {pipeline_mode = #tpu.pipeline_mode<synchronous>, transform_indices = @transform_5, window_bounds = array<i64: 4, 1, 16, 16>}, {transform_indices = @transform_6, window_bounds = array<i64: 64, 32>}]} {
    %c0 = arith.constant 0 : index
    %c0_0 = arith.constant 0 : index
    %0 = vector.load %arg1[%c0, %c0_0] : memref<64x32xbf16, #tpu.memory_space<vmem>>, vector<64x32xbf16>
    %c0_1 = arith.constant 0 : index
    %c0_2 = arith.constant 0 : index
    %1 = vector.load %arg2[%c0_1, %c0_2] : memref<32x96xbf16, #tpu.memory_space<vmem>>, vector<32x96xbf16>
    %cst = arith.constant dense<0.000000e+00> : vector<64x96xf32>
    %2 = tpu.matmul %0, %1, %cst {dimension_numbers = #tpu.dot_dimension_numbers<[1], [0], [0], [1], [0, 0, 1, 1], [], []>} : vector<64x32xbf16>, vector<32x96xbf16>, vector<64x96xf32> -> vector<64x96xf32>
    %c0_3 = arith.constant 0 : index
    %c0_4 = arith.constant 0 : index
    %3 = vector.load %arg3[%c0_3, %c0_4] : memref<1x96xf32, #tpu.memory_space<vmem>>, vector<1x96xf32>
    %4 = vector.broadcast %3 : vector<1x96xf32> to vector<64x96xf32>
    %5 = arith.addf %2, %4 : vector<64x96xf32>
    %6 = arith.truncf %5 : vector<64x96xf32> to vector<64x96xbf16>
    %7 = vector.extract_strided_slice %6 {offsets = [0, 0], sizes = [64, 8], strides = [1, 1]} : vector<64x96xbf16> to vector<64x8xbf16>
    %8 = vector.shape_cast %7 : vector<64x8xbf16> to vector<4x16x8xbf16>
    %9 = vector.extract_strided_slice %6 {offsets = [0, 32], sizes = [64, 8], strides = [1, 1]} : vector<64x96xbf16> to vector<64x8xbf16>
    %10 = vector.shape_cast %9 : vector<64x8xbf16> to vector<4x16x8xbf16>
    %11 = vector.extract_strided_slice %6 {offsets = [0, 64], sizes = [64, 8], strides = [1, 1]} : vector<64x96xbf16> to vector<64x8xbf16>
    %12 = vector.shape_cast %11 : vector<64x8xbf16> to vector<4x16x8xbf16>
    "tpu.trace_start"() <{level = 10 : i32, message = "wqd,wkd->wqk"}> : () -> ()
    %cst_5 = arith.constant dense<0.000000e+00> : vector<4x16x16xf32>
    %13 = tpu.matmul %8, %10, %cst_5 {dimension_numbers = #tpu.dot_dimension_numbers<[2], [2], [1], [1], [0, 0, 0, 1, 1, 1], [0], [0]>} : vector<4x16x8xbf16>, vector<4x16x8xbf16>, vector<4x16x16xf32> -> vector<4x16x16xf32>
    "tpu.trace_stop"() : () -> ()
    %c0_6 = arith.constant 0 : index
    %c0_7 = arith.constant 0 : index
    %c0_8 = arith.constant 0 : index
    %c0_9 = arith.constant 0 : index
    %14 = vector.load %arg6[%c0_6, %c0_7, %c0_8, %c0_9] : memref<4x1x16x16xf32, #tpu.memory_space<vmem>>, vector<1x1x16x16xf32>
    %15 = vector.shape_cast %14 : vector<1x1x16x16xf32> to vector<1x16x16xf32>
    %16 = vector.broadcast %15 : vector<1x16x16xf32> to vector<4x16x16xf32>
    %17 = arith.addf %13, %16 : vector<4x16x16xf32>
    %cst_10 = arith.constant dense<0xFF800000> : vector<4x16xf32>
    %18 = vector.multi_reduction <maximumf>, %17, %cst_10 [2] : vector<4x16x16xf32> to vector<4x16xf32>
    %19 = vector.shape_cast %18 : vector<4x16xf32> to vector<4x16x1xf32>
    %20 = vector.broadcast %19 : vector<4x16x1xf32> to vector<4x16x16xf32>
    %21 = arith.subf %17, %20 : vector<4x16x16xf32>
    %22 = math.exp %21 : vector<4x16x16xf32>
    %cst_11 = arith.constant dense<0.000000e+00> : vector<4x16xf32>
    %23 = vector.multi_reduction <add>, %22, %cst_11 [2] : vector<4x16x16xf32> to vector<4x16xf32>
    %24 = vector.shape_cast %23 : vector<4x16xf32> to vector<4x16x1xf32>
    %25 = arith.truncf %22 : vector<4x16x16xf32> to vector<4x16x16xbf16>
    "tpu.trace_start"() <{level = 10 : i32, message = "wqk,wkd->wqd"}> : () -> ()
    %cst_12 = arith.constant dense<0.000000e+00> : vector<4x16x8xf32>
    %26 = tpu.matmul %25, %12, %cst_12 {dimension_numbers = #tpu.dot_dimension_numbers<[2], [1], [1], [2], [0, 0, 0, 1, 1, 2], [0], [0]>} : vector<4x16x16xbf16>, vector<4x16x8xbf16>, vector<4x16x8xf32> -> vector<4x16x8xf32>
    "tpu.trace_stop"() : () -> ()
    %27 = tpu.reciprocal %24 {approx = true} : vector<4x16x1xf32> -> vector<4x16x1xf32>
    %28 = vector.broadcast %27 : vector<4x16x1xf32> to vector<4x16x8xf32>
    %29 = arith.mulf %26, %28 : vector<4x16x8xf32>
    %30 = vector.shape_cast %29 : vector<4x16x8xf32> to vector<64x8xf32>
    %31 = arith.truncf %30 : vector<64x8xf32> to vector<64x8xbf16>
    %32 = vector.extract_strided_slice %6 {offsets = [0, 8], sizes = [64, 8], strides = [1, 1]} : vector<64x96xbf16> to vector<64x8xbf16>
    %33 = vector.shape_cast %32 : vector<64x8xbf16> to vector<4x16x8xbf16>
    %34 = vector.extract_strided_slice %6 {offsets = [0, 40], sizes = [64, 8], strides = [1, 1]} : vector<64x96xbf16> to vector<64x8xbf16>
    %35 = vector.shape_cast %34 : vector<64x8xbf16> to vector<4x16x8xbf16>
    %36 = vector.extract_strided_slice %6 {offsets = [0, 72], sizes = [64, 8], strides = [1, 1]} : vector<64x96xbf16> to vector<64x8xbf16>
    %37 = vector.shape_cast %36 : vector<64x8xbf16> to vector<4x16x8xbf16>
    "tpu.trace_start"() <{level = 10 : i32, message = "wqd,wkd->wqk"}> : () -> ()
    %cst_13 = arith.constant dense<0.000000e+00> : vector<4x16x16xf32>
    %38 = tpu.matmul %33, %35, %cst_13 {dimension_numbers = #tpu.dot_dimension_numbers<[2], [2], [1], [1], [0, 0, 0, 1, 1, 1], [0], [0]>} : vector<4x16x8xbf16>, vector<4x16x8xbf16>, vector<4x16x16xf32> -> vector<4x16x16xf32>
    "tpu.trace_stop"() : () -> ()
    %c1 = arith.constant 1 : index
    %c0_14 = arith.constant 0 : index
    %c0_15 = arith.constant 0 : index
    %c0_16 = arith.constant 0 : index
    %39 = vector.load %arg6[%c1, %c0_14, %c0_15, %c0_16] : memref<4x1x16x16xf32, #tpu.memory_space<vmem>>, vector<1x1x16x16xf32>
    %40 = vector.shape_cast %39 : vector<1x1x16x16xf32> to vector<1x16x16xf32>
    %41 = vector.broadcast %40 : vector<1x16x16xf32> to vector<4x16x16xf32>
    %42 = arith.addf %38, %41 : vector<4x16x16xf32>
    %cst_17 = arith.constant dense<0xFF800000> : vector<4x16xf32>
    %43 = vector.multi_reduction <maximumf>, %42, %cst_17 [2] : vector<4x16x16xf32> to vector<4x16xf32>
    %44 = vector.shape_cast %43 : vector<4x16xf32> to vector<4x16x1xf32>
    %45 = vector.broadcast %44 : vector<4x16x1xf32> to vector<4x16x16xf32>
    %46 = arith.subf %42, %45 : vector<4x16x16xf32>
    %47 = math.exp %46 : vector<4x16x16xf32>
    %cst_18 = arith.constant dense<0.000000e+00> : vector<4x16xf32>
    %48 = vector.multi_reduction <add>, %47, %cst_18 [2] : vector<4x16x16xf32> to vector<4x16xf32>
    %49 = vector.shape_cast %48 : vector<4x16xf32> to vector<4x16x1xf32>
    %50 = arith.truncf %47 : vector<4x16x16xf32> to vector<4x16x16xbf16>
    "tpu.trace_start"() <{level = 10 : i32, message = "wqk,wkd->wqd"}> : () -> ()
    %cst_19 = arith.constant dense<0.000000e+00> : vector<4x16x8xf32>
    %51 = tpu.matmul %50, %37, %cst_19 {dimension_numbers = #tpu.dot_dimension_numbers<[2], [1], [1], [2], [0, 0, 0, 1, 1, 2], [0], [0]>} : vector<4x16x16xbf16>, vector<4x16x8xbf16>, vector<4x16x8xf32> -> vector<4x16x8xf32>
    "tpu.trace_stop"() : () -> ()
    %52 = tpu.reciprocal %49 {approx = true} : vector<4x16x1xf32> -> vector<4x16x1xf32>
    %53 = vector.broadcast %52 : vector<4x16x1xf32> to vector<4x16x8xf32>
    %54 = arith.mulf %51, %53 : vector<4x16x8xf32>
    %55 = vector.shape_cast %54 : vector<4x16x8xf32> to vector<64x8xf32>
    %56 = arith.truncf %55 : vector<64x8xf32> to vector<64x8xbf16>
    %57 = vector.extract_strided_slice %6 {offsets = [0, 16], sizes = [64, 8], strides = [1, 1]} : vector<64x96xbf16> to vector<64x8xbf16>
    %58 = vector.shape_cast %57 : vector<64x8xbf16> to vector<4x16x8xbf16>
    %59 = vector.extract_strided_slice %6 {offsets = [0, 48], sizes = [64, 8], strides = [1, 1]} : vector<64x96xbf16> to vector<64x8xbf16>
    %60 = vector.shape_cast %59 : vector<64x8xbf16> to vector<4x16x8xbf16>
    %61 = vector.extract_strided_slice %6 {offsets = [0, 80], sizes = [64, 8], strides = [1, 1]} : vector<64x96xbf16> to vector<64x8xbf16>
    %62 = vector.shape_cast %61 : vector<64x8xbf16> to vector<4x16x8xbf16>
    "tpu.trace_start"() <{level = 10 : i32, message = "wqd,wkd->wqk"}> : () -> ()
    %cst_20 = arith.constant dense<0.000000e+00> : vector<4x16x16xf32>
    %63 = tpu.matmul %58, %60, %cst_20 {dimension_numbers = #tpu.dot_dimension_numbers<[2], [2], [1], [1], [0, 0, 0, 1, 1, 1], [0], [0]>} : vector<4x16x8xbf16>, vector<4x16x8xbf16>, vector<4x16x16xf32> -> vector<4x16x16xf32>
    "tpu.trace_stop"() : () -> ()
    %c2 = arith.constant 2 : index
    %c0_21 = arith.constant 0 : index
    %c0_22 = arith.constant 0 : index
    %c0_23 = arith.constant 0 : index
    %64 = vector.load %arg6[%c2, %c0_21, %c0_22, %c0_23] : memref<4x1x16x16xf32, #tpu.memory_space<vmem>>, vector<1x1x16x16xf32>
    %65 = vector.shape_cast %64 : vector<1x1x16x16xf32> to vector<1x16x16xf32>
    %66 = vector.broadcast %65 : vector<1x16x16xf32> to vector<4x16x16xf32>
    %67 = arith.addf %63, %66 : vector<4x16x16xf32>
    %cst_24 = arith.constant dense<0xFF800000> : vector<4x16xf32>
    %68 = vector.multi_reduction <maximumf>, %67, %cst_24 [2] : vector<4x16x16xf32> to vector<4x16xf32>
    %69 = vector.shape_cast %68 : vector<4x16xf32> to vector<4x16x1xf32>
    %70 = vector.broadcast %69 : vector<4x16x1xf32> to vector<4x16x16xf32>
    %71 = arith.subf %67, %70 : vector<4x16x16xf32>
    %72 = math.exp %71 : vector<4x16x16xf32>
    %cst_25 = arith.constant dense<0.000000e+00> : vector<4x16xf32>
    %73 = vector.multi_reduction <add>, %72, %cst_25 [2] : vector<4x16x16xf32> to vector<4x16xf32>
    %74 = vector.shape_cast %73 : vector<4x16xf32> to vector<4x16x1xf32>
    %75 = arith.truncf %72 : vector<4x16x16xf32> to vector<4x16x16xbf16>
    "tpu.trace_start"() <{level = 10 : i32, message = "wqk,wkd->wqd"}> : () -> ()
    %cst_26 = arith.constant dense<0.000000e+00> : vector<4x16x8xf32>
    %76 = tpu.matmul %75, %62, %cst_26 {dimension_numbers = #tpu.dot_dimension_numbers<[2], [1], [1], [2], [0, 0, 0, 1, 1, 2], [0], [0]>} : vector<4x16x16xbf16>, vector<4x16x8xbf16>, vector<4x16x8xf32> -> vector<4x16x8xf32>
    "tpu.trace_stop"() : () -> ()
    %77 = tpu.reciprocal %74 {approx = true} : vector<4x16x1xf32> -> vector<4x16x1xf32>
    %78 = vector.broadcast %77 : vector<4x16x1xf32> to vector<4x16x8xf32>
    %79 = arith.mulf %76, %78 : vector<4x16x8xf32>
    %80 = vector.shape_cast %79 : vector<4x16x8xf32> to vector<64x8xf32>
    %81 = arith.truncf %80 : vector<64x8xf32> to vector<64x8xbf16>
    %82 = vector.extract_strided_slice %6 {offsets = [0, 24], sizes = [64, 8], strides = [1, 1]} : vector<64x96xbf16> to vector<64x8xbf16>
    %83 = vector.shape_cast %82 : vector<64x8xbf16> to vector<4x16x8xbf16>
    %84 = vector.extract_strided_slice %6 {offsets = [0, 56], sizes = [64, 8], strides = [1, 1]} : vector<64x96xbf16> to vector<64x8xbf16>
    %85 = vector.shape_cast %84 : vector<64x8xbf16> to vector<4x16x8xbf16>
    %86 = vector.extract_strided_slice %6 {offsets = [0, 88], sizes = [64, 8], strides = [1, 1]} : vector<64x96xbf16> to vector<64x8xbf16>
    %87 = vector.shape_cast %86 : vector<64x8xbf16> to vector<4x16x8xbf16>
    "tpu.trace_start"() <{level = 10 : i32, message = "wqd,wkd->wqk"}> : () -> ()
    %cst_27 = arith.constant dense<0.000000e+00> : vector<4x16x16xf32>
    %88 = tpu.matmul %83, %85, %cst_27 {dimension_numbers = #tpu.dot_dimension_numbers<[2], [2], [1], [1], [0, 0, 0, 1, 1, 1], [0], [0]>} : vector<4x16x8xbf16>, vector<4x16x8xbf16>, vector<4x16x16xf32> -> vector<4x16x16xf32>
    "tpu.trace_stop"() : () -> ()
    %c3 = arith.constant 3 : index
    %c0_28 = arith.constant 0 : index
    %c0_29 = arith.constant 0 : index
    %c0_30 = arith.constant 0 : index
    %89 = vector.load %arg6[%c3, %c0_28, %c0_29, %c0_30] : memref<4x1x16x16xf32, #tpu.memory_space<vmem>>, vector<1x1x16x16xf32>
    %90 = vector.shape_cast %89 : vector<1x1x16x16xf32> to vector<1x16x16xf32>
    %91 = vector.broadcast %90 : vector<1x16x16xf32> to vector<4x16x16xf32>
    %92 = arith.addf %88, %91 : vector<4x16x16xf32>
    %cst_31 = arith.constant dense<0xFF800000> : vector<4x16xf32>
    %93 = vector.multi_reduction <maximumf>, %92, %cst_31 [2] : vector<4x16x16xf32> to vector<4x16xf32>
    %94 = vector.shape_cast %93 : vector<4x16xf32> to vector<4x16x1xf32>
    %95 = vector.broadcast %94 : vector<4x16x1xf32> to vector<4x16x16xf32>
    %96 = arith.subf %92, %95 : vector<4x16x16xf32>
    %97 = math.exp %96 : vector<4x16x16xf32>
    %cst_32 = arith.constant dense<0.000000e+00> : vector<4x16xf32>
    %98 = vector.multi_reduction <add>, %97, %cst_32 [2] : vector<4x16x16xf32> to vector<4x16xf32>
    %99 = vector.shape_cast %98 : vector<4x16xf32> to vector<4x16x1xf32>
    %100 = arith.truncf %97 : vector<4x16x16xf32> to vector<4x16x16xbf16>
    "tpu.trace_start"() <{level = 10 : i32, message = "wqk,wkd->wqd"}> : () -> ()
    %cst_33 = arith.constant dense<0.000000e+00> : vector<4x16x8xf32>
    %101 = tpu.matmul %100, %87, %cst_33 {dimension_numbers = #tpu.dot_dimension_numbers<[2], [1], [1], [2], [0, 0, 0, 1, 1, 2], [0], [0]>} : vector<4x16x16xbf16>, vector<4x16x8xbf16>, vector<4x16x8xf32> -> vector<4x16x8xf32>
    "tpu.trace_stop"() : () -> ()
    %102 = tpu.reciprocal %99 {approx = true} : vector<4x16x1xf32> -> vector<4x16x1xf32>
    %103 = vector.broadcast %102 : vector<4x16x1xf32> to vector<4x16x8xf32>
    %104 = arith.mulf %101, %103 : vector<4x16x8xf32>
    %105 = vector.shape_cast %104 : vector<4x16x8xf32> to vector<64x8xf32>
    %106 = arith.truncf %105 : vector<64x8xf32> to vector<64x8xbf16>
    %107 = tpu.concatenate %31, %56, %81, %106 in 1 : vector<64x8xbf16>, vector<64x8xbf16>, vector<64x8xbf16>, vector<64x8xbf16> -> vector<64x32xbf16>
    %c0_34 = arith.constant 0 : index
    %c0_35 = arith.constant 0 : index
    %108 = vector.load %arg4[%c0_34, %c0_35] : memref<32x32xbf16, #tpu.memory_space<vmem>>, vector<32x32xbf16>
    %cst_36 = arith.constant dense<0.000000e+00> : vector<64x32xf32>
    %109 = tpu.matmul %107, %108, %cst_36 {dimension_numbers = #tpu.dot_dimension_numbers<[1], [0], [0], [1], [0, 0, 1, 1], [], []>} : vector<64x32xbf16>, vector<32x32xbf16>, vector<64x32xf32> -> vector<64x32xf32>
    %c0_37 = arith.constant 0 : index
    %c0_38 = arith.constant 0 : index
    %110 = vector.load %arg5[%c0_37, %c0_38] : memref<1x32xf32, #tpu.memory_space<vmem>>, vector<1x32xf32>
    %111 = vector.broadcast %110 : vector<1x32xf32> to vector<64x32xf32>
    %112 = arith.addf %109, %111 : vector<64x32xf32>
    %c0_39 = arith.constant 0 : index
    %c0_40 = arith.constant 0 : index
    %113 = vector.load %arg7[%c0_39, %c0_40] : memref<64x32xf32, #tpu.memory_space<vmem>>, vector<64x32xf32>
    tpu.vector_store %arg7[%c0_39, %c0_40], %112 {strides = array<i32>} : memref<64x32xf32, #tpu.memory_space<vmem>>, vector<64x32xf32>,
    return
  }
  func.func @transform_0(%arg0: i32) -> (i32, i32) {
    %c0_i32 = arith.constant 0 : i32
    %c0_i32_0 = arith.constant 0 : i32
    return %arg0, %c0_i32 : i32, i32
  }
  func.func @transform_1(%arg0: i32) -> (i32, i32) {
    %c0_i32 = arith.constant 0 : i32
    %c0_i32_0 = arith.constant 0 : i32
    %c0_i32_1 = arith.constant 0 : i32
    return %c0_i32, %c0_i32_0 : i32, i32
  }
  func.func @transform_2(%arg0: i32) -> (i32, i32) {
    %c0_i32 = arith.constant 0 : i32
    %c0_i32_0 = arith.constant 0 : i32
    %c0_i32_1 = arith.constant 0 : i32
    return %c0_i32, %c0_i32_0 : i32, i32
  }
  func.func @transform_3(%arg0: i32) -> (i32, i32) {
    %c0_i32 = arith.constant 0 : i32
    %c0_i32_0 = arith.constant 0 : i32
    %c0_i32_1 = arith.constant 0 : i32
    return %c0_i32, %c0_i32_0 : i32, i32
  }
  func.func @transform_4(%arg0: i32) -> (i32, i32) {
    %c0_i32 = arith.constant 0 : i32
    %c0_i32_0 = arith.constant 0 : i32
    %c0_i32_1 = arith.constant 0 : i32
    return %c0_i32, %c0_i32_0 : i32, i32
  }
  func.func @transform_5(%arg0: i32) -> (i32, i32, i32, i32) {
    %c0_i32 = arith.constant 0 : i32
    %c0_i32_0 = arith.constant 0 : i32
    %c0_i32_1 = arith.constant 0 : i32
    %c0_i32_2 = arith.constant 0 : i32
    %c0_i32_3 = arith.constant 0 : i32
    return %c0_i32, %c0_i32_0, %c0_i32_1, %c0_i32_2 : i32, i32, i32, i32
  }
  func.func @transform_6(%arg0: i32) -> (i32, i32) {
    %c0_i32 = arith.constant 0 : i32
    %c0_i32_0 = arith.constant 0 : i32
    return %arg0, %c0_i32 : i32, i32
  }
}

</mosaic_0001>

<bundles_post_ra>
// kernel: tpu_custom_call.1
= control target key start
LH: loop header
LB: loop body
LE: loop exit
PB: predicated region body
PF: predicated region fallthrough
CT: control target
= control target key end

     0   :  { %s3157_s21 = smov 0   ;;  %s3806_s0 = inlined_call_operand.vmem [shape: bf16[128,32], index: 0, kind: input, shape index: {}]   ;;  %s3807_s1 = inlined_call_operand.vmem [shape: bf16[32,96], index: 1, kind: input, shape index: {}]   ;;  %s3808_s2 = inlined_call_operand.vmem [shape: f32[1,96], index: 2, kind: input, shape index: {}]   ;;  %s3809_s3 = inlined_call_operand.vmem [shape: bf16[32,32], index: 3, kind: input, shape index: {}]   ;;  %s3810_s4 = inlined_call_operand.vmem [shape: f32[1,32], index: 4, kind: input, shape index: {}]   ;;  %s3811_s5 = inlined_call_operand.vmem [shape: f32[4,1,16,16], index: 5, kind: input, shape index: {}]   ;;  %s3812_s6 = inlined_call_operand.vmem [shape: f32[128,32], index: 6, kind: output, shape index: {}]  }
   0x1 LB: > { %s2575_s22 = sadd.s32 4294967295, %s3104_s21   ;;  %p2579_p0 = scmp.ge.s32.totalorder %s3104_s21, 1  ;;  %s3104_s21 = sphi %s3157_s21, %s16_s21  }
   0x2   : > { %p213_p1 = scmp.lt.s32.totalorder %s3104_s21, 3 }
   0x4   : > { %p214_p2 = pnand %p2579_p0, %p213_p1 }
   0x6   : > { %217 = sbr.rel (%p214_p2) target bundleno = 2539 (0x9eb), region = 44 }
   0xd   : > { %v2962_v0 = vld [vmem:[%s3807_s1] sm:$0xff]   ;;  %s2580_s25 = sshll.u32 %s2575_s22, 3  ;;  %v2963_v1 = vld [vmem:[%s3807_s1 + $0x8] sm:$0xff]   ;;  %vm307_vm0 = vcmask 261120   ;;  %v3813_v6 = vmov 0.0   ;;  %vm3107_vm1 = vmmov 0  }
   0xe   : > { %p244_p3 = scmp.lt.s32.totalorder %s2580_s25, 15  ;;  %2718 = vmatprep.subr.bf16.mxu0 %v2962_v0  ;;  %2934 = vmatprep.subr.bf16.mxu1 %v2962_v0  ;;  %v2584_v8 = vld [vmem:[%s3808_s2] ss:$0 sm:$0xff]  ;;  %s3108_s10 = smov 96   ;;  %vm394_vm2 = vcmask 64512   ;;  %vm592_vm3 = vcmask 130048  }
   0xf   : > { %2719 = vmatpush3.bf16.msra.mxu0 %v2962_v0  ;;  %2936 = vmatpush3.bf16.msra.mxu1 %v2962_v0  ;;  %s3109_s11 = smov 64   ;;  %v389_v37 = vld [vmem:[%s3811_s5] sm:$0xff]  ;;  %v390_v42 = vld [vmem:[%s3811_s5 + $0x8] sm:$0xff]  ;;  %s3110_s16 = smov 88   ;;  %vm2406_vm4 = vcmask 195584  }
  0x10   : > { %s3827_s25 = smov (!%p244_p3, %s2580_s25), 15  ;;  %2720 = vmatprep.subr.bf16.mxu0 %v2963_v1  ;;  %2935 = vmatprep.subr.bf16.mxu1 %v2963_v1  ;;  %s3111_s17 = smov 120  }
  0x11   : > { %s2581_s28 = sshll.u32 %s3827_s25, 2  ;;  %s3112_s18 = smov 56  }
  0x12   : > { %s247_s7 = scalar_lea.vmem %s3806_s0, %s2581_s28  ;;  %s3113_s24 = smov 80  }
  0x13   : > { %2721 = vmatpush3.bf16.msra.mxu0 %v2963_v1  ;;  %2937 = vmatpush3.bf16.msra.mxu1 %v2963_v1  ;;  %v2964_v2 = vld [vmem:[%s247_s7] sm:$0xff]   ;;  %v2965_v3 = vld [vmem:[%s247_s7 + $0x10] sm:$0xff]   ;;  %v2966_v4 = vld [vmem:[%s247_s7 + $0x8] sm:$0xff]   ;;  %s3114_s26 = smov 112   ;;  %s3115_s27 = smov 48  }
  0x14   : > { %2722 = vmatprep.mubr.msk.bf16.mxu0 %vm307_vm0, %v2964_v2  ;;  %2726 = vmatprep.mubr.msk.bf16.mxu1 %vm307_vm0, %v2965_v3  ;;  %v2967_v5 = vld [vmem:[%s247_s7 + $0x18] sm:$0xff]   ;;  %s3116_s8 = smov 72   ;;  %s3117_s9 = smov 104  }
  0x15   : > { %2730 = vmatprep.subr.bf16.mxu1 %v3813_v6  ;;  %2742 = vmatprep.subr.bf16.mxu0 %v3813_v6  ;;  %s3119_s15 = smov 8   ;;  %s3121_s22 = smov 24  }
  0x16   : > { %2723 = vmatmul.mubr.msk.bf16.vlgmr.msra.gmra.mrb[0].mxu0 %vm307_vm0, %v2966_v4  ;;  %2727 = vmatmul.mubr.msk.bf16.vlgmr.msra.gmra.mrb[0].mxu1 %vm307_vm0, %v2967_v5  ;;  %s2583_s23 = sshll.u32 %s3827_s25, 3 }
  0x17   : > { %2732 = vmatprep.mubr.msk.bf16.mxu1 %vm3107_vm1, %v3813_v6  ;;  %2744 = vmatprep.mubr.msk.bf16.mxu0 %vm3107_vm1, %v3813_v6  ;;  %s253_s29 = scalar_lea.vmem %s3812_s6, %s2583_s23 }
  0xe9   : > { %v2724_v7 = vpop.f32.mrb[0].mxu0  ;;  %v2728_v9 = vpop.f32.mrb[0].mxu1 }
  0xea   : > { %v354_v10 = vpop.f32.mrb[1].mxu0  ;;  %v379_v11 = vadd.f32 %v2728_v9, %v2584_v8  ;;  %v370_v12 = vpop.f32.mrb[1].mxu1  ;;  %v363_v14 = vadd.f32 %v2724_v7, %v2584_v8 }
  0xeb   : > { %v2725_v13 = vpop.f32.mrb[2].mxu0  ;;  %v371_v15 = vadd.f32 %v2584_v8, %v370_v12  ;;  %v2729_v17 = vpop.f32.mrb[2].mxu1  ;;  %v355_v19 = vadd.f32 %v2584_v8, %v354_v10 }
  0xec   : > { %v366_v16 = vadd.f32 %v2725_v13, %v2584_v8  ;;  %v357_v18 = vpop.f32.mrb[3].mxu0  ;;  %v382_v20 = vadd.f32 %v2729_v17, %v2584_v8  ;;  %v373_v22 = vpop.f32.mrb[3].mxu1 }
  0xed   : > { %v358_v21 = vadd.f32 %v2584_v8, %v357_v18  ;;  %v374_v24 = vadd.f32 %v2584_v8, %v373_v22 }
  0xee   : > { %v3190_v23 = vpack.c.bf16 %v366_v16, %v363_v14  ;;  %v3192_v25 = vpack.c.bf16 %v382_v20, %v379_v11 }
  0xef   : > { %v3194_v26 = vpack.c.bf16 %v358_v21, %v355_v19  ;;  %v3196_v27 = vpack.c.bf16 %v374_v24, %v371_v15 }
  0xf1   : > { %392 = vrot.lane.b32.xlu0 %v3194_v26, %s3108_s10  ;;  %493 = vrot.lane.b32.xlu1 %v3196_v27, %s3108_s10 }
  0xf5   : > { %443 = vrot.lane.b32.xlu0 %v3190_v23, %s3108_s10  ;;  %543 = vrot.lane.b32.xlu1 %v3192_v25, %s3108_s10  ;;  %s3118_s10 = smov 40  }
  0xf9   : > { %669 = vrot.lane.b32.xlu1 %v3194_v26, %s3109_s11 }
 0x163   : > { %v393_v28 = vpop.permute.xlu0 %392  ;;  %v494_v29 = vpop.permute.xlu1 %493 }
 0x164   : > { %v399_v30 = vsel %vm394_vm2, %v393_v28, 0  ;;  %v499_v31 = vsel %vm394_vm2, %v494_v29, 0 }
 0x165   : > { %2731 = vmatpush3.bf16.xpose.msra.mxu1 %v399_v30  ;;  %2743 = vmatpush3.bf16.xpose.msra.mxu0 %v499_v31 }
 0x166   : > { %2736 = vmatprep.subr.bf16.mxu1 %v3813_v6  ;;  %2754 = vmatprep.subr.bf16.mxu0 %v3813_v6 }
 0x167   : > { %v544_v32 = vpop.permute.xlu1 %543  ;;  %v444_v33 = vpop.permute.xlu0 %443 }
 0x168   : > { %v449_v34 = vsel %vm394_vm2, %v444_v33, 0  ;;  %v549_v36 = vsel %vm394_vm2, %v544_v32, 0 }
 0x16b   : > { %v670_v35 = vpop.permute.xlu1 %669 }
 0x16c   : > { %2733 = vmatmul.mubr.msk.bf16.vlgmr.msra.gmra.mrb[4].mxu1 %vm394_vm2, %v3194_v26  ;;  %2745 = vmatmul.mubr.msk.bf16.vlgmr.msra.gmra.mrb[4].mxu0 %vm394_vm2, %v3196_v27 }
 0x16d   : > { %2737 = vmatpush3.bf16.xpose.msra.mxu1 %v449_v34  ;;  %2755 = vmatpush3.bf16.msra.mxu0 %v670_v35 }
 0x16e   : > { %2738 = vmatprep.mubr.msk.bf16.mxu1 %vm3107_vm1, %v3813_v6  ;;  %2748 = vmatprep.subr.bf16.mxu1 %v3813_v6 }
 0x16f   : > { %2756 = vmatprep.mubr.msk.bf16.mxu0 %vm3107_vm1, %v3813_v6  ;;  %2766 = vmatprep.subr.bf16.mxu0 %v3813_v6 }
 0x174   : > { %2739 = vmatmul.mubr.msk.bf16.vlgmr.msra.gmra.mrb[8].mxu1 %vm394_vm2, %v3190_v23 }
 0x175   : > { %2749 = vmatpush3.bf16.xpose.msra.mxu1 %v549_v36  ;;  %2750 = vmatprep.mubr.msk.bf16.mxu1 %vm3107_vm1, %v3813_v6 }
 0x176   : > { %2760 = vmatprep.subr.bf16.mxu1 %v3813_v6 }
 0x17c   : > { %2751 = vmatmul.mubr.msk.bf16.vlgmr.msra.gmra.mrb[12].mxu1 %vm394_vm2, %v3192_v25 }
 0x17d   : > { %2762 = vmatprep.mubr.msk.bf16.mxu1 %vm3107_vm1, %v3813_v6 }
 0x23f   : > { %v435_v38 = vpop.f32.mrb[4].mxu1  ;;  %v535_v40 = vpop.f32.mrb[4].mxu0 }
 0x240   : > { %v436_v39 = vadd.f32 %v435_v38, %v389_v37  ;;  %v2734_v41 = vpop.f32.mrb[5].mxu1  ;;  %v3235_v43 = vadd.f32 %v535_v40, %v389_v37  ;;  %v2746_v44 = vpop.f32.mrb[5].mxu0 }
 0x241   : > { %v438_v45 = vpop.f32.mrb[6].mxu1  ;;  %v538_v46 = vpop.f32.mrb[6].mxu0 }
 0x242   : > { %v2735_v47 = vpop.f32.mrb[7].mxu1  ;;  %v593_v48 = vsel %vm592_vm3, %v436_v39, -inf  ;;  %v439_v49 = vadd.f32 %v438_v45, %v390_v42  ;;  %v539_v50 = vadd.f32 %v538_v46, %v390_v42  ;;  %v2747_v51 = vpop.f32.mrb[7].mxu0  ;;  %v605_v52 = vsel %vm592_vm3, %v3235_v43, -inf }
 0x243   : > { %594 = vmax.xlane.f32.xlu0 %v593_v48  ;;  %606 = vmax.xlane.f32.xlu1 %v605_v52 }
 0x244   : > { %v608_v53 = vsel %vm592_vm3, %v539_v50, -inf  ;;  %v596_v54 = vsel %vm592_vm3, %v439_v49, -inf }
 0x247   : > { %609 = vmax.xlane.f32.xlu0 %v608_v53  ;;  %v485_v55 = vpop.f32.mrb[8].mxu1  ;;  %597 = vmax.xlane.f32.xlu1 %v596_v54 }
 0x248   : > { %v486_v56 = vadd.f32 %v485_v55, %v389_v37  ;;  %v2740_v57 = vpop.f32.mrb[9].mxu1 }
 0x249   : > { %v488_v58 = vpop.f32.mrb[10].mxu1 }
 0x24a   : > { %v489_v59 = vadd.f32 %v488_v58, %v390_v42  ;;  %v2741_v60 = vpop.f32.mrb[11].mxu1  ;;  %v599_v61 = vsel %vm592_vm3, %v486_v56, -inf }
 0x24b   : > { %600 = vmax.xlane.f32.xlu0 %v599_v61 }
 0x24c   : > { %v602_v62 = vsel %vm592_vm3, %v489_v59, -inf }
 0x24f   : > { %603 = vmax.xlane.f32.xlu0 %v602_v62  ;;  %v585_v63 = vpop.f32.mrb[12].mxu1 }
 0x250   : > { %v2752_v0 = vpop.f32.mrb[13].mxu1  ;;  %v3250_v3 = vadd.f32 %v585_v63, %v389_v37 }
 0x251   : > { %v588_v1 = vpop.f32.mrb[14].mxu1 }
 0x252   : > { %v2753_v2 = vpop.f32.mrb[15].mxu1  ;;  %v3252_v4 = vadd.f32 %v588_v1, %v390_v42  ;;  %v611_v5 = vsel %vm592_vm3, %v3250_v3, -inf }
 0x254   : > { %v614_v7 = vsel %vm592_vm3, %v3252_v4, -inf }
 0x258   : > { %763 = vrot.lane.b32.xlu1 %v3196_v27, %s3109_s11 }
 0x25c   : > { %810 = vrot.lane.b32.xlu1 %v3192_v25, %s3109_s11 }
 0x265   : > { %716 = vrot.lane.b32.xlu0 %v3190_v23, %s3109_s11 }
 0x280   : > { %612 = vmax.xlane.f32.xlu1 %v611_v5 }
 0x284   : > { %615 = vmax.xlane.f32.xlu0 %v614_v7 }
 0x291   : > { %933 = vrot.lane.b32.xlu1 %v3190_v23, %s3110_s16 }
 0x295   : > { %984 = vrot.lane.b32.xlu1 %v3196_v27, %s3110_s16 }
 0x299   : > { %1035 = vrot.lane.b32.xlu1 %v3192_v25, %s3110_s16 }
 0x29a   : > { %882 = vrot.lane.b32.xlu0 %v3194_v26, %s3110_s16  ;;  %s3120_s16 = smov 16  }
 0x29d   : > { %1033 = vrot.lane.b32.xlu1 %v3192_v25, %s3111_s17 }
 0x29e   : > { %880 = vrot.lane.b32.xlu0 %v3194_v26, %s3111_s17 }
 0x2a1   : > { %1160 = vrot.lane.b32.xlu1 %v3194_v26, %s3112_s18 }
 0x2a2   : > { %931 = vrot.lane.b32.xlu0 %v3190_v23, %s3111_s17 }
 0x2a5   : > { %1254 = vrot.lane.b32.xlu1 %v3196_v27, %s3112_s18 }
 0x2a6   : > { %982 = vrot.lane.b32.xlu0 %v3196_v27, %s3111_s17 }
 0x2a9   : > { %1301 = vrot.lane.b32.xlu1 %v3192_v25, %s3112_s18 }
 0x2aa   : > { %1207 = vrot.lane.b32.xlu0 %v3190_v23, %s3112_s18 }
 0x2d0   : > { %v595_v8 = vpop.xlane.xlu0 %594  ;;  %v607_v9 = vpop.xlane.xlu1 %606 }
 0x2d1   : > { %v617_v10 = vsub.f32 %v436_v39, %v595_v8  ;;  %v621_v19 = vsub.f32 %v3235_v43, %v607_v9 }
 0x2d3   : > { %v625_v12 = vmul.f32 1.442695, %v617_v10  ;;  %v633_v28 = vmul.f32 1.442695, %v621_v19 }
 0x2d4   : > { %v610_v11 = vpop.xlane.xlu0 %609  ;;  %v598_v13 = vpop.xlane.xlu1 %597 }
 0x2d5   : > { %v618_v14 = vsub.f32 %v439_v49, %v598_v13  ;;  %v622_v15 = vsub.f32 %v539_v50, %v610_v11  ;;  %2970 = vpow2.f32 %v625_v12 }
 0x2d7   : > { %v627_v16 = vmul.f32 1.442695, %v618_v14  ;;  %v635_v20 = vmul.f32 1.442695, %v622_v15  ;;  %v2603_v14 = vld [vmem:[%s3811_s5 + $0x10] sm:$0xff] }
 0x2d8   : > { %v601_v17 = vpop.xlane.xlu0 %600  ;;  %v764_v34 = vpop.permute.xlu1 %763 }
 0x2d9   : > { %v619_v18 = vsub.f32 %v486_v56, %v601_v17  ;;  %2972 = vpow2.f32 %v627_v16  ;;  %v2604_v16 = vld [vmem:[%s3811_s5 + $0x18] sm:$0xff] }
 0x2da   : > { %2974 = vpow2.f32 %v635_v20 }
 0x2db   : > { %v629_v21 = vmul.f32 1.442695, %v619_v18 }
 0x2dc   : > { %v604_v22 = vpop.xlane.xlu0 %603  ;;  %v811_v41 = vpop.permute.xlu1 %810 }
 0x2dd   : > { %v620_v24 = vsub.f32 %v489_v59, %v604_v22  ;;  %2976 = vpow2.f32 %v629_v21 }
 0x2df   : > { %v631_v29 = vmul.f32 1.442695, %v620_v24  ;;  %v3272_v31 = vpop.eup %2970 }
 0x2e0   : > { %v717_v30 = vpop.permute.xlu0 %716 }
 0x2e1   : > { %2978 = vpow2.f32 %v631_v29  ;;  %2761 = vmatpush3.bf16.msra.mxu1 %v717_v30 }
 0x2e2   : > { %2980 = vpow2.f32 %v633_v28  ;;  %2772 = vmatprep.subr.bf16.mxu1 %v3813_v6 }
 0x2e3   : > { %v3274_v32 = vpop.eup %2972 }
 0x2e4   : > { %v665_v33 = vpack.c.bf16 %v3274_v32, %v3272_v31  ;;  %v3281_v35 = vpop.eup %2974 }
 0x2e6   : > { %2757 = vmatmul.mubr.msk.bf16.vlgmr.msra.gmra.mrb[8].mxu0 %vm592_vm3, %v665_v33 }
 0x2e7   : > { %2767 = vmatpush3.bf16.msra.mxu0 %v764_v34  ;;  %2768 = vmatprep.mubr.msk.bf16.mxu0 %vm3107_vm1, %v3813_v6  ;;  %v3284_v36 = vpop.eup %2976 }
 0x2e8   : > { %2778 = vmatprep.subr.bf16.mxu0 %v3813_v6 }
 0x2eb   : > { %v3286_v37 = vpop.eup %2978 }
 0x2ec   : > { %v3288_v38 = vpop.eup %2980  ;;  %v666_v39 = vpack.c.bf16 %v3286_v37, %v3284_v36 }
 0x2ed   : > { %v667_v40 = vpack.c.bf16 %v3281_v35, %v3288_v38 }
 0x2ee   : > { %2763 = vmatmul.mubr.msk.bf16.vlgmr.msra.gmra.mrb[16].mxu1 %vm592_vm3, %v666_v39 }
 0x2ef   : > { %2769 = vmatmul.mubr.msk.bf16.vlgmr.msra.gmra.mrb[12].mxu0 %vm592_vm3, %v667_v40  ;;  %2773 = vmatpush3.bf16.msra.mxu1 %v811_v41 }
 0x2f0   : > { %2780 = vmatprep.mubr.msk.bf16.mxu0 %vm3107_vm1, %v3813_v6  ;;  %2774 = vmatprep.mubr.msk.bf16.mxu1 %vm3107_vm1, %v3813_v6 }
 0x2f1   : > { %2784 = vmatprep.subr.bf16.mxu1 %v3813_v6 }
 0x30d   : > { %v613_v42 = vpop.xlane.xlu1 %612 }
 0x30e   : > { %v623_v43 = vsub.f32 %v3250_v3, %v613_v42 }
 0x310   : > { %v637_v44 = vmul.f32 1.442695, %v623_v43 }
 0x311   : > { %v616_v45 = vpop.xlane.xlu0 %615  ;;  %v934_v46 = vpop.permute.xlu1 %933 }
 0x312   : > { %v624_v47 = vsub.f32 %v3252_v4, %v616_v45  ;;  %2982 = vpow2.f32 %v637_v44  ;;  %v939_v60 = vsel %vm394_vm2, %v934_v46, 0 }
 0x314   : > { %v639_v48 = vmul.f32 1.442695, %v624_v47 }
 0x315   : > { %v883_v49 = vpop.permute.xlu0 %882  ;;  %v985_v50 = vpop.permute.xlu1 %984 }
 0x316   : > { %2984 = vpow2.f32 %v639_v48  ;;  %v888_v51 = vsel %vm394_vm2, %v883_v49, 0  ;;  %v990_v54 = vsel %vm394_vm2, %v985_v50, 0 }
 0x317   : > { %2779 = vmatpush3.bf16.xpose.msra.mxu0 %v888_v51 }
 0x318   : > { %2790 = vmatprep.subr.bf16.mxu0 %v3813_v6 }
 0x319   : > { %v881_v52 = vpop.permute.xlu0 %880  ;;  %v1036_v53 = vpop.permute.xlu1 %1035 }
 0x31a   : > { %v1041_v63 = vsel %vm394_vm2, %v1036_v53, 0 }
 0x31c   : > { %v3307_v55 = vpop.eup %2982 }
 0x31d   : > { %v932_v56 = vpop.permute.xlu0 %931  ;;  %v1034_v58 = vpop.permute.xlu1 %1033 }
 0x31e   : > { %2781 = vmatmul.mubr.msk.bf16.vlgmr.msra.gmra.mrb[16].mxu0 %vm394_vm2, %v881_v52 }
 0x31f   : > { %2791 = vmatpush3.bf16.xpose.msra.mxu0 %v990_v54  ;;  %2792 = vmatprep.mubr.msk.bf16.mxu0 %vm3107_vm1, %v3813_v6 }
 0x320   : > { %v3311_v57 = vpop.eup %2984  ;;  %2802 = vmatprep.subr.bf16.mxu0 %v3813_v6 }
 0x321   : > { %v668_v59 = vpack.c.bf16 %v3311_v57, %v3307_v55  ;;  %v983_v61 = vpop.permute.xlu0 %982  ;;  %v1161_v62 = vpop.permute.xlu1 %1160 }
 0x323   : > { %2775 = vmatmul.mubr.msk.bf16.vlgmr.msra.gmra.mrb[20].mxu1 %vm592_vm3, %v668_v59 }
 0x324   : > { %2785 = vmatpush3.bf16.xpose.msra.mxu1 %v939_v60  ;;  %2786 = vmatprep.mubr.msk.bf16.mxu1 %vm3107_vm1, %v3813_v6 }
 0x325   : > { %2796 = vmatprep.subr.bf16.mxu1 %v3813_v6  ;;  %v1208_v0 = vpop.permute.xlu0 %1207 }
 0x326   : > { %2793 = vmatmul.mubr.msk.bf16.vlgmr.msra.gmra.mrb[20].mxu0 %vm394_vm2, %v983_v61 }
 0x327   : > { %2803 = vmatpush3.bf16.msra.mxu0 %v1161_v62  ;;  %2804 = vmatprep.mubr.msk.bf16.mxu0 %vm3107_vm1, %v3813_v6 }
 0x328   : > { %2814 = vmatprep.subr.bf16.mxu0 %v3813_v6 }
 0x32b   : > { %2787 = vmatmul.mubr.msk.bf16.vlgmr.msra.gmra.mrb[24].mxu1 %vm394_vm2, %v932_v56 }
 0x32c   : > { %2797 = vmatpush3.bf16.xpose.msra.mxu1 %v1041_v63  ;;  %2798 = vmatprep.mubr.msk.bf16.mxu1 %vm3107_vm1, %v3813_v6 }
 0x32d   : > { %2808 = vmatprep.subr.bf16.mxu1 %v3813_v6 }
 0x333   : > { %2799 = vmatmul.mubr.msk.bf16.vlgmr.msra.gmra.mrb[28].mxu1 %vm394_vm2, %v1034_v58 }
 0x334   : > { %2809 = vmatpush3.bf16.msra.mxu1 %v1208_v0  ;;  %2810 = vmatprep.mubr.msk.bf16.mxu1 %vm3107_vm1, %v3813_v6  ;;  %v1255_v0 = vpop.permute.xlu1 %1254 }
 0x335   : > { %2820 = vmatprep.subr.bf16.mxu1 %v3813_v6 }
 0x3b9   : > { %v3334_v1 = vpop.f32.mrb[8].mxu0 }
 0x3ba   : > { %v2758_v2 = vpop.f32.mrb[9].mxu0 }
 0x3bb   : > { %v3336_v3 = vpop.f32.mrb[10].mxu0  ;;  %v1302_v2 = vpop.permute.xlu1 %1301 }
 0x3bc   : > { %v2759_v4 = vpop.f32.mrb[11].mxu0 }
 0x3c1   : > { %v3338_v5 = vpop.f32.mrb[16].mxu1 }
 0x3c2   : > { %v3340_v7 = vpop.f32.mrb[12].mxu0  ;;  %v2764_v8 = vpop.f32.mrb[17].mxu1 }
 0x3c3   : > { %3815 = vst [vmem:[#allocation2_spill] sm:$0xff] %v3340_v7  ;;  %v2770_v9 = vpop.f32.mrb[13].mxu0  ;;  %v3342_v10 = vpop.f32.mrb[18].mxu1 }
 0x3c4   : > { %3816 = vst [vmem:[#allocation3_spill] sm:$0xff] %v3342_v10  ;;  %v3344_v11 = vpop.f32.mrb[14].mxu0  ;;  %v2765_v12 = vpop.f32.mrb[19].mxu1 }
 0x3c5   : > { %3817 = vst [vmem:[#allocation4_spill] sm:$0xff] %v3344_v11  ;;  %v2771_v13 = vpop.f32.mrb[15].mxu0 }
 0x3f1   : > { %v924_v15 = vpop.f32.mrb[16].mxu0 }
 0x3f2   : > { %v3352_v17 = vadd.f32 %v2603_v14, %v924_v15  ;;  %v2782_v18 = vpop.f32.mrb[17].mxu0 }
 0x3f3   : > { %v927_v19 = vpop.f32.mrb[18].mxu0 }
 0x3f4   : > { %v928_v20 = vadd.f32 %v2604_v16, %v927_v19  ;;  %v2783_v21 = vpop.f32.mrb[19].mxu0  ;;  %v1084_v22 = vsel %vm592_vm3, %v3352_v17, -inf }
 0x3f5   : > { %1085 = vmax.xlane.f32.xlu0 %v1084_v22 }
 0x3f6   : > { %v3356_v24 = vpop.f32.mrb[20].mxu1  ;;  %v1087_v28 = vsel %vm592_vm3, %v928_v20, -inf }
 0x3f7   : > { %3818 = vst [vmem:[#allocation5_spill] sm:$0xff] %v3356_v24  ;;  %v2776_v29 = vpop.f32.mrb[21].mxu1  ;;  %1088 = vmax.xlane.f32.xlu1 %v1087_v28 }
 0x3f8   : > { %v3359_v30 = vpop.f32.mrb[22].mxu1 }
 0x3f9   : > { %3819 = vst [vmem:[#allocation6_spill] sm:$0xff] %v3359_v30  ;;  %v2777_v33 = vpop.f32.mrb[23].mxu1  ;;  %v1026_v34 = vpop.f32.mrb[20].mxu0 }
 0x3fa   : > { %v3361_v39 = vadd.f32 %v2603_v14, %v1026_v34  ;;  %v2794_v40 = vpop.f32.mrb[21].mxu0 }
 0x3fb   : > { %v1029_v41 = vpop.f32.mrb[22].mxu0 }
 0x3fc   : > { %v2795_v42 = vpop.f32.mrb[23].mxu0  ;;  %v1096_v43 = vsel %vm592_vm3, %v3361_v39, -inf  ;;  %v1030_v51 = vadd.f32 %v2604_v16, %v1029_v41 }
 0x3fd   : > { %1097 = vmax.xlane.f32.xlu1 %v1096_v43 }
 0x3fe   : > { %v975_v44 = vpop.f32.mrb[24].mxu1  ;;  %v1099_v62 = vsel %vm592_vm3, %v1030_v51, -inf }
 0x3ff   : > { %v976_v45 = vadd.f32 %v2603_v14, %v975_v44  ;;  %v2788_v46 = vpop.f32.mrb[25].mxu1 }
 0x400   : > { %v978_v47 = vpop.f32.mrb[26].mxu1 }
 0x401   : > { %v979_v48 = vadd.f32 %v2604_v16, %v978_v47  ;;  %v2789_v49 = vpop.f32.mrb[27].mxu1  ;;  %v1090_v50 = vsel %vm592_vm3, %v976_v45, -inf }
 0x402   : > { %1091 = vmax.xlane.f32.xlu0 %v1090_v50 }
 0x403   : > { %v1093_v52 = vsel %vm592_vm3, %v979_v48, -inf }
 0x406   : > { %1094 = vmax.xlane.f32.xlu0 %v1093_v52  ;;  %v1077_v53 = vpop.f32.mrb[28].mxu1 }
 0x407   : > { %v1078_v54 = vadd.f32 %v2603_v14, %v1077_v53  ;;  %v2800_v56 = vpop.f32.mrb[29].mxu1 }
 0x408   : > { %v1080_v58 = vpop.f32.mrb[30].mxu1 }
 0x409   : > { %v1081_v59 = vadd.f32 %v2604_v16, %v1080_v58  ;;  %v2801_v60 = vpop.f32.mrb[31].mxu1  ;;  %v1102_v61 = vsel %vm592_vm3, %v1078_v54, -inf }
 0x40a   : > { %1103 = vmax.xlane.f32.xlu1 %v1102_v61  ;;  %1100 = vmax.xlane.f32.xlu0 %v1099_v62 }
 0x40b   : > { %v1105_v63 = vsel %vm592_vm3, %v1081_v59, -inf }
 0x40e   : > { %1106 = vmax.xlane.f32.xlu0 %v1105_v63 }
 0x41b   : > { %1424 = vrot.lane.b32.xlu1 %v3190_v23, %s3113_s24 }
 0x41f   : > { %1475 = vrot.lane.b32.xlu1 %v3196_v27, %s3113_s24 }
 0x423   : > { %1526 = vrot.lane.b32.xlu1 %v3192_v25, %s3113_s24 }
 0x424   : > { %1373 = vrot.lane.b32.xlu0 %v3194_v26, %s3113_s24 }
 0x427   : > { %1524 = vrot.lane.b32.xlu1 %v3192_v25, %s3114_s26 }
 0x428   : > { %1371 = vrot.lane.b32.xlu0 %v3194_v26, %s3114_s26 }
 0x42b   : > { %1651 = vrot.lane.b32.xlu1 %v3194_v26, %s3115_s27 }
 0x42c   : > { %1422 = vrot.lane.b32.xlu0 %v3190_v23, %s3114_s26 }
 0x42f   : > { %1745 = vrot.lane.b32.xlu1 %v3196_v27, %s3115_s27 }
 0x430   : > { %1473 = vrot.lane.b32.xlu0 %v3196_v27, %s3114_s26 }
 0x433   : > { %1792 = vrot.lane.b32.xlu1 %v3192_v25, %s3115_s27 }
 0x434   : > { %1698 = vrot.lane.b32.xlu0 %v3190_v23, %s3115_s27 }
 0x482   : > { %v1086_v4 = vpop.xlane.xlu0 %1085 }
 0x483   : > { %v1108_v8 = vsub.f32 %v3352_v17, %v1086_v4 }
 0x484   : > { %v1089_v9 = vpop.xlane.xlu1 %1088 }
 0x485   : > { %v1116_v12 = vmul.f32 1.442695, %v1108_v8  ;;  %v1109_v13 = vsub.f32 %v928_v20, %v1089_v9 }
 0x487   : > { %v1118_v14 = vmul.f32 1.442695, %v1109_v13  ;;  %2986 = vpow2.f32 %v1116_v12 }
 0x489   : > { %2988 = vpow2.f32 %v1118_v14 }
 0x48a   : > { %v1098_v18 = vpop.xlane.xlu1 %1097 }
 0x48b   : > { %v1112_v29 = vsub.f32 %v3361_v39, %v1098_v18 }
 0x48d   : > { %v1124_v41 = vmul.f32 1.442695, %v1112_v29 }
 0x48f   : > { %v1092_v15 = vpop.xlane.xlu0 %1091 }
 0x490   : > { %v1110_v16 = vsub.f32 %v976_v45, %v1092_v15 }
 0x491   : > { %v3383_v19 = vpop.eup %2986 }
 0x492   : > { %v1120_v22 = vmul.f32 1.442695, %v1110_v16 }
 0x493   : > { %v3385_v21 = vpop.eup %2988  ;;  %v1095_v28 = vpop.xlane.xlu0 %1094 }
 0x494   : > { %v1111_v33 = vsub.f32 %v979_v48, %v1095_v28  ;;  %v1156_v17 = vpack.c.bf16 %v3385_v21, %v3383_v19  ;;  %2990 = vpow2.f32 %v1120_v22 }
 0x496   : > { %v1122_v34 = vmul.f32 1.442695, %v1111_v33  ;;  %2805 = vmatmul.mubr.msk.bf16.vlgmr.msra.gmra.mrb[24].mxu0 %vm592_vm3, %v1156_v17 }
 0x497   : > { %2815 = vmatpush3.bf16.msra.mxu0 %v1255_v0  ;;  %v1104_v20 = vpop.xlane.xlu1 %1103  ;;  %v1101_v40 = vpop.xlane.xlu0 %1100  ;;  %2816 = vmatprep.mubr.msk.bf16.mxu0 %vm3107_vm1, %v3813_v6 }
 0x498   : > { %2992 = vpow2.f32 %v1122_v34  ;;  %v1114_v42 = vsub.f32 %v1078_v54, %v1104_v20  ;;  %v1113_v43 = vsub.f32 %v1030_v51, %v1101_v40  ;;  %2826 = vmatprep.subr.bf16.mxu0 %v3813_v6 }
 0x499   : > { %2994 = vpow2.f32 %v1124_v41 }
 0x49a   : > { %v1126_v39 = vmul.f32 1.442695, %v1113_v43  ;;  %v1128_v44 = vmul.f32 1.442695, %v1114_v42 }
 0x49b   : > { %v1107_v45 = vpop.xlane.xlu0 %1106  ;;  %v1425_v50 = vpop.permute.xlu1 %1424 }
 0x49c   : > { %v1115_v46 = vsub.f32 %v1081_v59, %v1107_v45  ;;  %2996 = vpow2.f32 %v1126_v39  ;;  %v1430_v0 = vsel %vm394_vm2, %v1425_v50, 0  ;;  %v2614_v50 = vld [vmem:[%s3811_s5 + $0x28] sm:$0xff] }
 0x49d   : > { %2998 = vpow2.f32 %v1128_v44 }
 0x49e   : > { %v1130_v47 = vmul.f32 1.442695, %v1115_v46  ;;  %v3394_v48 = vpop.eup %2990  ;;  %v2613_v46 = vld [vmem:[%s3811_s5 + $0x20] sm:$0xff] }
 0x49f   : > { %v1374_v53 = vpop.permute.xlu0 %1373  ;;  %v1476_v56 = vpop.permute.xlu1 %1475 }
 0x4a0   : > { %3000 = vpow2.f32 %v1130_v47  ;;  %v1379_v61 = vsel %vm394_vm2, %v1374_v53, 0  ;;  %v1481_v4 = vsel %vm394_vm2, %v1476_v56, 0 }
 0x4a2   : > { %v3396_v49 = vpop.eup %2992 }
 0x4a3   : > { %v1157_v52 = vpack.c.bf16 %v3396_v49, %v3394_v48  ;;  %v3401_v51 = vpop.eup %2994  ;;  %v1372_v63 = vpop.permute.xlu0 %1371 }
 0x4a5   : > { %2811 = vmatmul.mubr.msk.bf16.vlgmr.msra.gmra.mrb[32].mxu1 %vm592_vm3, %v1157_v52 }
 0x4a6   : > { %2821 = vmatpush3.bf16.msra.mxu1 %v1302_v2  ;;  %2822 = vmatprep.mubr.msk.bf16.mxu1 %vm3107_vm1, %v3813_v6  ;;  %v3405_v54 = vpop.eup %2996  ;;  %v1527_v2 = vpop.permute.xlu1 %1526 }
 0x4a7   : > { %2832 = vmatprep.subr.bf16.mxu1 %v3813_v6  ;;  %v1158_v58 = vpack.c.bf16 %v3405_v54, %v3401_v51  ;;  %v3410_v59 = vpop.eup %2998  ;;  %v1423_v8 = vpop.permute.xlu0 %1422  ;;  %v1532_v12 = vsel %vm394_vm2, %v1527_v2, 0 }
 0x4a9   : > { %2817 = vmatmul.mubr.msk.bf16.vlgmr.msra.gmra.mrb[28].mxu0 %vm592_vm3, %v1158_v58 }
 0x4aa   : > { %v3412_v60 = vpop.eup %3000  ;;  %2827 = vmatpush3.bf16.xpose.msra.mxu0 %v1379_v61  ;;  %2828 = vmatprep.mubr.msk.bf16.mxu0 %vm3107_vm1, %v3813_v6  ;;  %v1525_v9 = vpop.permute.xlu1 %1524 }
 0x4ab   : > { %v1159_v62 = vpack.c.bf16 %v3412_v60, %v3410_v59  ;;  %2838 = vmatprep.subr.bf16.mxu0 %v3813_v6  ;;  %v1474_v13 = vpop.permute.xlu0 %1473 }
 0x4ad   : > { %2823 = vmatmul.mubr.msk.bf16.vlgmr.msra.gmra.mrb[36].mxu1 %vm592_vm3, %v1159_v62 }
 0x4ae   : > { %2834 = vmatprep.mubr.msk.bf16.mxu1 %vm3107_vm1, %v3813_v6  ;;  %v1652_v14 = vpop.permute.xlu1 %1651 }
 0x4af   : > { %2833 = vmatpush3.bf16.xpose.msra.mxu1 %v1430_v0  ;;  %v1699_v15 = vpop.permute.xlu0 %1698 }
 0x4b0   : > { %2844 = vmatprep.subr.bf16.mxu1 %v3813_v6 }
 0x4b1   : > { %2829 = vmatmul.mubr.msk.bf16.vlgmr.msra.gmra.mrb[32].mxu0 %vm394_vm2, %v1372_v63 }
 0x4b2   : > { %2839 = vmatpush3.bf16.xpose.msra.mxu0 %v1481_v4  ;;  %2840 = vmatprep.mubr.msk.bf16.mxu0 %vm3107_vm1, %v3813_v6 }
 0x4b3   : > { %2850 = vmatprep.subr.bf16.mxu0 %v3813_v6 }
 0x4b6   : > { %2835 = vmatmul.mubr.msk.bf16.vlgmr.msra.gmra.mrb[40].mxu1 %vm394_vm2, %v1423_v8 }
 0x4b7   : > { %2845 = vmatpush3.bf16.xpose.msra.mxu1 %v1532_v12  ;;  %2846 = vmatprep.mubr.msk.bf16.mxu1 %vm3107_vm1, %v3813_v6 }
 0x4b8   : > { %2856 = vmatprep.subr.bf16.mxu1 %v3813_v6 }
 0x4b9   : > { %2841 = vmatmul.mubr.msk.bf16.vlgmr.msra.gmra.mrb[36].mxu0 %vm394_vm2, %v1474_v13 }
 0x4ba   : > { %2851 = vmatpush3.bf16.msra.mxu0 %v1652_v14  ;;  %2852 = vmatprep.mubr.msk.bf16.mxu0 %vm3107_vm1, %v3813_v6 }
 0x4bb   : > { %2862 = vmatprep.subr.bf16.mxu0 %v3813_v6 }
 0x4be   : > { %2847 = vmatmul.mubr.msk.bf16.vlgmr.msra.gmra.mrb[44].mxu1 %vm394_vm2, %v1525_v9 }
 0x4bf   : > { %2857 = vmatpush3.bf16.msra.mxu1 %v1699_v15  ;;  %2858 = vmatprep.mubr.msk.bf16.mxu1 %vm3107_vm1, %v3813_v6 }
 0x4c0   : > { %2868 = vmatprep.subr.bf16.mxu1 %v3813_v6 }
 0x569   : > { %v3444_v16 = vpop.f32.mrb[24].mxu0 }
 0x56a   : > { %v2806_v18 = vpop.f32.mrb[25].mxu0 }
 0x56b   : > { %v3446_v22 = vpop.f32.mrb[26].mxu0 }
 0x56c   : > { %v2807_v28 = vpop.f32.mrb[27].mxu0 }
 0x578   : > { %v3448_v29 = vpop.f32.mrb[32].mxu1 }
 0x579   : > { %v2812_v33 = vpop.f32.mrb[33].mxu1 }
 0x57a   : > { %v3450_v17 = vpop.f32.mrb[34].mxu1 }
 0x57b   : > { %v2813_v34 = vpop.f32.mrb[35].mxu1 }
 0x57c   : > { %v3452_v20 = vpop.f32.mrb[28].mxu0 }
 0x57d   : > { %v2818_v40 = vpop.f32.mrb[29].mxu0 }
 0x57e   : > { %v3454_v41 = vpop.f32.mrb[30].mxu0 }
 0x57f   : > { %v2819_v42 = vpop.f32.mrb[31].mxu0 }
 0x580   : > { %v3456_v43 = vpop.f32.mrb[36].mxu1 }
 0x581   : > { %v2824_v39 = vpop.f32.mrb[37].mxu1 }
 0x582   : > { %v3458_v44 = vpop.f32.mrb[38].mxu1 }
 0x583   : > { %v2825_v45 = vpop.f32.mrb[39].mxu1 }
 0x584   : > { %v1415_v47 = vpop.f32.mrb[32].mxu0 }
 0x585   : > { %v1416_v52 = vadd.f32 %v2613_v46, %v1415_v47  ;;  %v2830_v53 = vpop.f32.mrb[33].mxu0 }
 0x586   : > { %v1418_v56 = vpop.f32.mrb[34].mxu0 }
 0x587   : > { %v1419_v58 = vadd.f32 %v2614_v50, %v1418_v56  ;;  %v2831_v61 = vpop.f32.mrb[35].mxu0  ;;  %v1575_v62 = vsel %vm592_vm3, %v1416_v52, -inf }
 0x588   : > { %1576 = vmax.xlane.f32.xlu0 %v1575_v62 }
 0x589   : > { %v1466_v63 = vpop.f32.mrb[40].mxu1  ;;  %v1578_v4 = vsel %vm592_vm3, %v1419_v58, -inf }
 0x58a   : > { %v1467_v0 = vadd.f32 %v2613_v46, %v1466_v63  ;;  %v2836_v2 = vpop.f32.mrb[41].mxu1  ;;  %1579 = vmax.xlane.f32.xlu1 %v1578_v4 }
 0x58b   : > { %v1469_v8 = vpop.f32.mrb[42].mxu1 }
 0x58c   : > { %v1470_v9 = vadd.f32 %v2614_v50, %v1469_v8  ;;  %v2837_v12 = vpop.f32.mrb[43].mxu1  ;;  %v1581_v13 = vsel %vm592_vm3, %v1467_v0, -inf  ;;  %v1517_v14 = vpop.f32.mrb[36].mxu0 }
 0x58d   : > { %1582 = vmax.xlane.f32.xlu0 %v1581_v13  ;;  %v1518_v15 = vadd.f32 %v2613_v46, %v1517_v14  ;;  %v2842_v18 = vpop.f32.mrb[37].mxu0 }
 0x58e   : > { %v1520_v28 = vpop.f32.mrb[38].mxu0  ;;  %v1584_v40 = vsel %vm592_vm3, %v1470_v9, -inf }
 0x58f   : > { %v1521_v33 = vadd.f32 %v2614_v50, %v1520_v28  ;;  %v2843_v34 = vpop.f32.mrb[39].mxu0  ;;  %v1587_v42 = vsel %vm592_vm3, %v1518_v15, -inf }
 0x590   : > { %1588 = vmax.xlane.f32.xlu1 %v1587_v42 }
 0x591   : > { %1585 = vmax.xlane.f32.xlu0 %v1584_v40  ;;  %v1568_v39 = vpop.f32.mrb[44].mxu1  ;;  %v1590_v63 = vsel %vm592_vm3, %v1521_v33, -inf }
 0x592   : > { %v1569_v45 = vadd.f32 %v2613_v46, %v1568_v39  ;;  %v2848_v47 = vpop.f32.mrb[45].mxu1  ;;  %v1746_v46 = vpop.permute.xlu1 %1745 }
 0x593   : > { %v1571_v53 = vpop.f32.mrb[46].mxu1 }
 0x594   : > { %v1572_v56 = vadd.f32 %v2614_v50, %v1571_v53  ;;  %v2849_v61 = vpop.f32.mrb[47].mxu1  ;;  %v1593_v62 = vsel %vm592_vm3, %v1569_v45, -inf }
 0x595   : > { %1594 = vmax.xlane.f32.xlu1 %v1593_v62  ;;  %1591 = vmax.xlane.f32.xlu0 %v1590_v63 }
 0x596   : > { %v1596_v2 = vsel %vm592_vm3, %v1572_v56, -inf  ;;  %v1793_v50 = vpop.permute.xlu1 %1792 }
 0x599   : > { %1597 = vmax.xlane.f32.xlu0 %v1596_v2 }
 0x5a6   : > { %1915 = vrot.lane.b32.xlu1 %v3190_v23, %s3116_s8 }
 0x5aa   : > { %1966 = vrot.lane.b32.xlu1 %v3196_v27, %s3116_s8 }
 0x5ae   : > { %2017 = vrot.lane.b32.xlu1 %v3192_v25, %s3116_s8 }
 0x5af   : > { %1864 = vrot.lane.b32.xlu0 %v3194_v26, %s3116_s8 }
 0x5b2   : > { %2015 = vrot.lane.b32.xlu1 %v3192_v25, %s3117_s9 }
 0x5b3   : > { %1862 = vrot.lane.b32.xlu0 %v3194_v26, %s3117_s9 }
 0x5b6   : > { %2142 = vrot.lane.b32.xlu1 %v3194_v26, %s3118_s10 }
 0x5b7   : > { %1913 = vrot.lane.b32.xlu0 %v3190_v23, %s3117_s9 }
 0x5bb   : > { %1964 = vrot.lane.b32.xlu0 %v3196_v27, %s3117_s9 }
 0x615   : > { %v1577_v4 = vpop.xlane.xlu0 %1576 }
 0x616   : > { %v1599_v8 = vsub.f32 %v1416_v52, %v1577_v4 }
 0x617   : > { %v1580_v12 = vpop.xlane.xlu1 %1579 }
 0x618   : > { %v1607_v13 = vmul.f32 1.442695, %v1599_v8  ;;  %v1600_v14 = vsub.f32 %v1419_v58, %v1580_v12 }
 0x61a   : > { %v1583_v18 = vpop.xlane.xlu0 %1582  ;;  %v1609_v28 = vmul.f32 1.442695, %v1600_v14  ;;  %3002 = vpow2.f32 %v1607_v13 }
 0x61b   : > { %v1601_v34 = vsub.f32 %v1467_v0, %v1583_v18 }
 0x61c   : > { %3004 = vpow2.f32 %v1609_v28 }
 0x61d   : > { %v1589_v40 = vpop.xlane.xlu1 %1588  ;;  %v1611_v39 = vmul.f32 1.442695, %v1601_v34 }
 0x61e   : > { %v1586_v42 = vpop.xlane.xlu0 %1585  ;;  %v1603_v26 = vsub.f32 %v1518_v15, %v1589_v40 }
 0x61f   : > { %v1602_v47 = vsub.f32 %v1470_v9, %v1586_v42  ;;  %3006 = vpow2.f32 %v1611_v39 }
 0x620   : > { %v1615_v63 = vmul.f32 1.442695, %v1603_v26 }
 0x621   : > { %v1613_v53 = vmul.f32 1.442695, %v1602_v47 }
 0x622   : > { %v1595_v61 = vpop.xlane.xlu1 %1594  ;;  %v1592_v62 = vpop.xlane.xlu0 %1591 }
 0x623   : > { %v1605_v2 = vsub.f32 %v1569_v45, %v1595_v61  ;;  %v1604_v52 = vsub.f32 %v1521_v33, %v1592_v62  ;;  %3008 = vpow2.f32 %v1613_v53 }
 0x624   : > { %v3484_v58 = vpop.eup %3002  ;;  %3010 = vpow2.f32 %v1615_v63 }
 0x625   : > { %v1617_v4 = vmul.f32 1.442695, %v1604_v52  ;;  %v1619_v8 = vmul.f32 1.442695, %v1605_v2 }
 0x626   : > { %v1598_v0 = vpop.xlane.xlu0 %1597  ;;  %v3486_v12 = vpop.eup %3004 }
 0x627   : > { %v1606_v13 = vsub.f32 %v1572_v56, %v1598_v0  ;;  %3012 = vpow2.f32 %v1617_v4  ;;  %v1647_v9 = vpack.c.bf16 %v3486_v12, %v3484_v58  ;;  %v1916_v45 = vpop.permute.xlu1 %1915 }
 0x628   : > { %3014 = vpow2.f32 %v1619_v8  ;;  %v1921_v61 = vsel %vm394_vm2, %v1916_v45, 0 }
 0x629   : > { %v1621_v15 = vmul.f32 1.442695, %v1606_v13  ;;  %2853 = vmatmul.mubr.msk.bf16.vlgmr.msra.gmra.mrb[40].mxu0 %vm592_vm3, %v1647_v9  ;;  %v3494_v33 = vpop.eup %3006 }
 0x62a   : > { %2863 = vmatpush3.bf16.msra.mxu0 %v1746_v46  ;;  %2864 = vmatprep.mubr.msk.bf16.mxu0 %vm3107_vm1, %v3813_v6  ;;  %v1865_v46 = vpop.permute.xlu0 %1864 }
 0x62b   : > { %3016 = vpow2.f32 %v1621_v15  ;;  %2874 = vmatprep.subr.bf16.mxu0 %v3813_v6  ;;  %v1967_v34 = vpop.permute.xlu1 %1966  ;;  %v1870_v26 = vsel %vm394_vm2, %v1865_v46, 0 }
 0x62c   : > { %v1972_v62 = vsel %vm394_vm2, %v1967_v34, 0 }
 0x62d   : > { %v3496_v14 = vpop.eup %3008 }
 0x62e   : > { %v1648_v56 = vpack.c.bf16 %v3496_v14, %v3494_v33  ;;  %v3500_v18 = vpop.eup %3010  ;;  %v1863_v47 = vpop.permute.xlu0 %1862 }
 0x62f   : > { %v2018_v53 = vpop.permute.xlu1 %2017 }
 0x630   : > { %2859 = vmatmul.mubr.msk.bf16.vlgmr.msra.gmra.mrb[48].mxu1 %vm592_vm3, %v1648_v56  ;;  %v2023_v52 = vsel %vm394_vm2, %v2018_v53, 0 }
 0x631   : > { %v3503_v28 = vpop.eup %3012  ;;  %2869 = vmatpush3.bf16.msra.mxu1 %v1793_v50  ;;  %2870 = vmatprep.mubr.msk.bf16.mxu1 %vm3107_vm1, %v3813_v6 }
 0x632   : > { %v1649_v40 = vpack.c.bf16 %v3503_v28, %v3500_v18  ;;  %2880 = vmatprep.subr.bf16.mxu1 %v3813_v6  ;;  %v3510_v42 = vpop.eup %3014  ;;  %v1914_v63 = vpop.permute.xlu0 %1913 }
 0x633   : > { %v2016_v2 = vpop.permute.xlu1 %2015 }
 0x634   : > { %2865 = vmatmul.mubr.msk.bf16.vlgmr.msra.gmra.mrb[44].mxu0 %vm592_vm3, %v1649_v40 }
 0x635   : > { %v3512_v39 = vpop.eup %3016  ;;  %2875 = vmatpush3.bf16.xpose.msra.mxu0 %v1870_v26  ;;  %2876 = vmatprep.mubr.msk.bf16.mxu0 %vm3107_vm1, %v3813_v6 }
 0x636   : > { %v1650_v50 = vpack.c.bf16 %v3512_v39, %v3510_v42  ;;  %2886 = vmatprep.subr.bf16.mxu0 %v3813_v6  ;;  %v1965_v4 = vpop.permute.xlu0 %1964 }
 0x637   : > { %v2143_v8 = vpop.permute.xlu1 %2142 }
 0x638   : > { %2871 = vmatmul.mubr.msk.bf16.vlgmr.msra.gmra.mrb[52].mxu1 %vm592_vm3, %v1650_v50 }
 0x639   : > { %2882 = vmatprep.mubr.msk.bf16.mxu1 %vm3107_vm1, %v3813_v6 }
 0x63a   : > { %2881 = vmatpush3.bf16.xpose.msra.mxu1 %v1921_v61 }
 0x63b   : > { %2892 = vmatprep.subr.bf16.mxu1 %v3813_v6 }
 0x63c   : > { %2877 = vmatmul.mubr.msk.bf16.vlgmr.msra.gmra.mrb[48].mxu0 %vm394_vm2, %v1863_v47 }
 0x63d   : > { %2887 = vmatpush3.bf16.xpose.msra.mxu0 %v1972_v62  ;;  %2888 = vmatprep.mubr.msk.bf16.mxu0 %vm3107_vm1, %v3813_v6 }
 0x63e   : > { %2898 = vmatprep.subr.bf16.mxu0 %v3813_v6 }
 0x641   : > { %2883 = vmatmul.mubr.msk.bf16.vlgmr.msra.gmra.mrb[56].mxu1 %vm394_vm2, %v1914_v63  ;;  %v2623_v63 = vld [vmem:[%s3811_s5 + $0x30] sm:$0xff] }
 0x642   : > { %2893 = vmatpush3.bf16.xpose.msra.mxu1 %v2023_v52  ;;  %2894 = vmatprep.mubr.msk.bf16.mxu1 %vm3107_vm1, %v3813_v6 }
 0x643   : > { %2904 = vmatprep.subr.bf16.mxu1 %v3813_v6 }
 0x644   : > { %2889 = vmatmul.mubr.msk.bf16.vlgmr.msra.gmra.mrb[52].mxu0 %vm394_vm2, %v1965_v4  ;;  %v2624_v4 = vld [vmem:[%s3811_s5 + $0x38] sm:$0xff] }
 0x645   : > { %2899 = vmatpush3.bf16.msra.mxu0 %v2143_v8  ;;  %2900 = vmatprep.mubr.msk.bf16.mxu0 %vm3107_vm1, %v3813_v6 }
 0x646   : > { %2910 = vmatprep.subr.bf16.mxu0 %v3813_v6 }
 0x649   : > { %2895 = vmatmul.mubr.msk.bf16.vlgmr.msra.gmra.mrb[60].mxu1 %vm394_vm2, %v2016_v2 }
 0x64a   : > { %2906 = vmatprep.mubr.msk.bf16.mxu1 %vm3107_vm1, %v3813_v6 }
 0x6fc   : > { %v3543_v0 = vpop.f32.mrb[40].mxu0 }
 0x6fd   : > { %v2854_v13 = vpop.f32.mrb[41].mxu0 }
 0x6fe   : > { %v3545_v9 = vpop.f32.mrb[42].mxu0 }
 0x6ff   : > { %v2855_v15 = vpop.f32.mrb[43].mxu0 }
 0x703   : > { %v3547_v45 = vpop.f32.mrb[48].mxu1 }
 0x704   : > { %v2860_v56 = vpop.f32.mrb[49].mxu1 }
 0x705   : > { %v3549_v46 = vpop.f32.mrb[50].mxu1 }
 0x706   : > { %v2861_v34 = vpop.f32.mrb[51].mxu1 }
 0x707   : > { %v3551_v40 = vpop.f32.mrb[44].mxu0 }
 0x708   : > { %v2866_v26 = vpop.f32.mrb[45].mxu0 }
 0x709   : > { %v3553_v50 = vpop.f32.mrb[46].mxu0 }
 0x70a   : > { %v2867_v47 = vpop.f32.mrb[47].mxu0 }
 0x70b   : > { %v3555_v53 = vpop.f32.mrb[52].mxu1 }
 0x70c   : > { %v2872_v61 = vpop.f32.mrb[53].mxu1 }
 0x70d   : > { %v3557_v62 = vpop.f32.mrb[54].mxu1 }
 0x70e   : > { %v2873_v2 = vpop.f32.mrb[55].mxu1 }
 0x70f   : > { %v1906_v52 = vpop.f32.mrb[48].mxu0 }
 0x710   : > { %v3565_v8 = vadd.f32 %v2623_v63, %v1906_v52  ;;  %v2878_v13 = vpop.f32.mrb[49].mxu0 }
 0x711   : > { %v1909_v15 = vpop.f32.mrb[50].mxu0 }
 0x712   : > { %v3567_v56 = vadd.f32 %v2624_v4, %v1909_v15  ;;  %v2879_v34 = vpop.f32.mrb[51].mxu0  ;;  %v2066_v26 = vsel %vm592_vm3, %v3565_v8, -inf }
 0x713   : > { %2067 = vmax.xlane.f32.xlu0 %v2066_v26 }
 0x714   : > { %v1957_v47 = vpop.f32.mrb[56].mxu1  ;;  %v2069_v61 = vsel %vm592_vm3, %v3567_v56, -inf }
 0x715   : > { %v3573_v2 = vadd.f32 %v2623_v63, %v1957_v47  ;;  %v2884_v6 = vpop.f32.mrb[57].mxu1  ;;  %2070 = vmax.xlane.f32.xlu1 %v2069_v61 }
 0x716   : > { %v1960_v30 = vpop.f32.mrb[58].mxu1 }
 0x717   : > { %v3575_v52 = vadd.f32 %v2624_v4, %v1960_v30  ;;  %v2885_v13 = vpop.f32.mrb[59].mxu1  ;;  %v2072_v15 = vsel %vm592_vm3, %v3573_v2, -inf  ;;  %v2008_v34 = vpop.f32.mrb[52].mxu0 }
 0x718   : > { %2073 = vmax.xlane.f32.xlu0 %v2072_v15  ;;  %v3579_v24 = vadd.f32 %v2623_v63, %v2008_v34  ;;  %v2890_v26 = vpop.f32.mrb[53].mxu0 }
 0x719   : > { %v2011_v11 = vpop.f32.mrb[54].mxu0  ;;  %v2075_v6 = vsel %vm592_vm3, %v3575_v52, -inf }
 0x71a   : > { %v2891_v7 = vpop.f32.mrb[55].mxu0  ;;  %v2078_v47 = vsel %vm592_vm3, %v3579_v24, -inf  ;;  %v3583_v10 = vadd.f32 %v2624_v4, %v2011_v11 }
 0x71b   : > { %2079 = vmax.xlane.f32.xlu1 %v2078_v47 }
 0x71c   : > { %2076 = vmax.xlane.f32.xlu0 %v2075_v6  ;;  %v2059_v30 = vpop.f32.mrb[60].mxu1  ;;  %v2081_v11 = vsel %vm592_vm3, %v3583_v10, -inf  ;;  %v1623_v6 = vsel %vm592_vm3, %v3484_v58, 0.0  ;;  %v1632_v58 = vsel %vm592_vm3, %v3496_v14, 0.0  ;;  %v1644_v14 = vsel %vm592_vm3, %v3512_v39, 0.0 }
 0x71d   : > { %v3587_v61 = vadd.f32 %v2623_v63, %v2059_v30  ;;  %v2896_v13 = vpop.f32.mrb[61].mxu1  ;;  %v1135_v63 = vsel %vm592_vm3, %v3385_v21, 0.0  ;;  %v1626_v21 = vsel %vm592_vm3, %v3486_v12, 0.0  ;;  %v1153_v12 = vsel %vm592_vm3, %v3412_v60, 0.0 }
 0x71e   : > { %v2062_v15 = vpop.f32.mrb[62].mxu1 }
 0x71f   : > { %v3589_v34 = vadd.f32 %v2624_v4, %v2062_v15  ;;  %v2897_v26 = vpop.f32.mrb[63].mxu1  ;;  %v2084_v7 = vsel %vm592_vm3, %v3587_v61, -inf  ;;  %v1132_v4 = vsel %vm592_vm3, %v3383_v19, 0.0  ;;  %v1144_v19 = vsel %vm592_vm3, %v3401_v51, 0.0 }
 0x720   : > { %2085 = vmax.xlane.f32.xlu1 %v2084_v7  ;;  %2082 = vmax.xlane.f32.xlu0 %v2081_v11  ;;  %v1641_v51 = vsel %vm592_vm3, %v3510_v42, 0.0 }
 0x721   : > { %v2087_v47 = vsel %vm592_vm3, %v3589_v34, -inf }
 0x724   : > { %2088 = vmax.xlane.f32.xlu0 %v2087_v47 }
 0x731   : > { %2236 = vrot.lane.b32.xlu1 %v3196_v27, %s3118_s10  ;;  %v1138_v27 = vsel %vm592_vm3, %v3394_v48, 0.0  ;;  %v1150_v48 = vsel %vm592_vm3, %v3410_v59, 0.0  ;;  %v1638_v59 = vsel %vm592_vm3, %v3503_v28, 0.0 }
 0x735   : > { %2283 = vrot.lane.b32.xlu1 %v3192_v25, %s3118_s10  ;;  %v1629_v25 = vsel %vm592_vm3, %v3494_v33, 0.0  ;;  %v1147_v33 = vsel %vm592_vm3, %v3405_v54, 0.0 }
 0x73a   : > { %2189 = vrot.lane.b32.xlu0 %v3190_v23, %s3118_s10  ;;  %v1141_v23 = vsel %vm592_vm3, %v3396_v49, 0.0  ;;  %v1635_v49 = vsel %vm592_vm3, %v3500_v18, 0.0 }
 0x759   : > { %1136 = vadd.xlane.f32.xlu1 %v1135_v63  ;;  %1133 = vadd.xlane.f32.xlu0 %v1132_v4 }
 0x75d   : > { %1624 = vadd.xlane.f32.xlu1 %v1623_v6  ;;  %1139 = vadd.xlane.f32.xlu0 %v1138_v27 }
 0x761   : > { %1630 = vadd.xlane.f32.xlu1 %v1629_v25  ;;  %1142 = vadd.xlane.f32.xlu0 %v1141_v23 }
 0x765   : > { %1145 = vadd.xlane.f32.xlu1 %v1144_v19  ;;  %1627 = vadd.xlane.f32.xlu0 %v1626_v21 }
 0x769   : > { %1151 = vadd.xlane.f32.xlu1 %v1150_v48  ;;  %1633 = vadd.xlane.f32.xlu0 %v1632_v58 }
 0x76d   : > { %1636 = vadd.xlane.f32.xlu1 %v1635_v49  ;;  %1148 = vadd.xlane.f32.xlu0 %v1147_v33 }
 0x771   : > { %1642 = vadd.xlane.f32.xlu1 %v1641_v51  ;;  %1154 = vadd.xlane.f32.xlu0 %v1153_v12  ;;  %v3820_v12 = vmov 0.0  }
 0x775   : > { %1639 = vadd.xlane.f32.xlu0 %v1638_v59 }
 0x779   : > { %1645 = vadd.xlane.f32.xlu0 %v1644_v14 }
 0x7a0   : > { %v2068_v18 = vpop.xlane.xlu0 %2067 }
 0x7a1   : > { %v2090_v54 = vsub.f32 %v3565_v8, %v2068_v18 }
 0x7a2   : > { %v2071_v30 = vpop.xlane.xlu1 %2070 }
 0x7a3   : > { %v2098_v13 = vmul.f32 1.442695, %v2090_v54  ;;  %v2091_v42 = vsub.f32 %v3567_v56, %v2071_v30 }
 0x7a5   : > { %3018 = vpow2.f32 %v2098_v13  ;;  %v2100_v15 = vmul.f32 1.442695, %v2091_v42  ;;  %v2074_v60 = vpop.xlane.xlu0 %2073 }
 0x7a6   : > { %v2092_v26 = vsub.f32 %v3573_v2, %v2074_v60 }
 0x7a7   : > { %3020 = vpow2.f32 %v2100_v15 }
 0x7a8   : > { %v2102_v7 = vmul.f32 1.442695, %v2092_v26  ;;  %v2080_v28 = vpop.xlane.xlu1 %2079 }
 0x7a9   : > { %v2094_v11 = vsub.f32 %v3579_v24, %v2080_v28  ;;  %v2077_v47 = vpop.xlane.xlu0 %2076  ;;  %v641_v28 = vsel %vm592_vm3, %v3272_v31, 0.0  ;;  %v650_v31 = vsel %vm592_vm3, %v3286_v37, 0.0 }
 0x7aa   : > { %3022 = vpow2.f32 %v2102_v7  ;;  %v2093_v39 = vsub.f32 %v3575_v52, %v2077_v47 }
 0x7ab   : > { %v2106_v63 = vmul.f32 1.442695, %v2094_v11 }
 0x7ac   : > { %v2104_v8 = vmul.f32 1.442695, %v2093_v39  ;;  %v647_v39 = vsel %vm592_vm3, %v3284_v36, 0.0  ;;  %v656_v36 = vsel %vm592_vm3, %v3281_v35, 0.0 }
 0x7ad   : > { %3024 = vpow2.f32 %v2106_v63  ;;  %v2086_v4 = vpop.xlane.xlu1 %2085  ;;  %v2083_v6 = vpop.xlane.xlu0 %2082  ;;  %v644_v63 = vsel %vm592_vm3, %v3274_v32, 0.0  ;;  %v662_v32 = vsel %vm592_vm3, %v3311_v57, 0.0 }
 0x7ae   : > { %3026 = vpow2.f32 %v2104_v8  ;;  %v2096_v56 = vsub.f32 %v3587_v61, %v2086_v4  ;;  %v2095_v27 = vsub.f32 %v3583_v10, %v2083_v6  ;;  %v653_v8 = vsel %vm592_vm3, %v3288_v38, 0.0 }
 0x7af   : > { %v3019_v2 = vpop.eup %3018  ;;  %v659_v4 = vsel %vm592_vm3, %v3307_v55, 0.0 }
 0x7b0   : > { %v2110_v25 = vmul.f32 1.442695, %v2096_v56  ;;  %v2108_v23 = vmul.f32 1.442695, %v2095_v27  ;;  %v2114_v19 = vsel %vm592_vm3, %v3019_v2, 0.0 }
 0x7b1   : > { %v3021_v24 = vpop.eup %3020  ;;  %v2089_v21 = vpop.xlane.xlu0 %2088  ;;  %2115 = vadd.xlane.f32.xlu1 %v2114_v19 }
 0x7b2   : > { %3028 = vpow2.f32 %v2110_v25  ;;  %v2097_v52 = vsub.f32 %v3589_v34, %v2089_v21  ;;  %v2117_v48 = vsel %vm592_vm3, %v3021_v24, 0.0  ;;  %v2138_v58 = vpack.c.bf16 %v3021_v24, %v3019_v2  ;;  %v2237_v61 = vpop.permute.xlu1 %2236 }
 0x7b3   : > { %3030 = vpow2.f32 %v2108_v23  ;;  %2118 = vadd.xlane.f32.xlu0 %v2117_v48 }
 0x7b4   : > { %v3023_v49 = vpop.eup %3022  ;;  %v2112_v33 = vmul.f32 1.442695, %v2097_v52  ;;  %2901 = vmatmul.mubr.msk.bf16.vlgmr.msra.gmra.mrb[56].mxu0 %vm592_vm3, %v2138_v58 }
 0x7b5   : > { %2911 = vmatpush3.bf16.msra.mxu0 %v2237_v61  ;;  %v2190_v10 = vpop.permute.xlu0 %2189  ;;  %v2120_v51 = vsel %vm592_vm3, %v3023_v49, 0.0  ;;  %2912 = vmatprep.mubr.msk.bf16.mxu0 %vm3107_vm1, %v3820_v12 }
 0x7b6   : > { %3032 = vpow2.f32 %v2112_v33  ;;  %2121 = vadd.xlane.f32.xlu1 %v2120_v51  ;;  %2905 = vmatpush3.bf16.msra.mxu1 %v2190_v10  ;;  %v2284_v30 = vpop.permute.xlu1 %2283 }
 0x7b7   : > { %v3025_v34 = vpop.eup %3024  ;;  %2916 = vmatprep.subr.bf16.mxu1 %v3820_v12 }
 0x7b8   : > { %v3027_v59 = vpop.eup %3026  ;;  %v2126_v14 = vsel %vm592_vm3, %v3025_v34, 0.0 }
 0x7b9   : > { %v2123_v18 = vsel %vm592_vm3, %v3027_v59, 0.0  ;;  %v2139_v54 = vpack.c.bf16 %v3027_v59, %v3023_v49 }
 0x7ba   : > { %2127 = vadd.xlane.f32.xlu1 %v2126_v14  ;;  %2124 = vadd.xlane.f32.xlu0 %v2123_v18 }
 0x7bb   : > { %2907 = vmatmul.mubr.msk.bf16.vlgmr.msra.gmra.mrb[64].mxu1 %vm592_vm3, %v2139_v54 }
 0x7bc   : > { %v3029_v13 = vpop.eup %3028  ;;  %2917 = vmatpush3.bf16.msra.mxu1 %v2284_v30  ;;  %2918 = vmatprep.mubr.msk.bf16.mxu1 %vm3107_vm1, %v3820_v12 }
 0x7bd   : > { %v3031_v42 = vpop.eup %3030  ;;  %v2132_v15 = vsel %vm592_vm3, %v3029_v13, 0.0 }
 0x7be   : > { %2133 = vadd.xlane.f32.xlu1 %v2132_v15  ;;  %v2129_v60 = vsel %vm592_vm3, %v3031_v42, 0.0  ;;  %v2140_v26 = vpack.c.bf16 %v3031_v42, %v3025_v34 }
 0x7bf   : > { %2130 = vadd.xlane.f32.xlu0 %v2129_v60 }
 0x7c0   : > { %v3033_v7 = vpop.eup %3032  ;;  %2913 = vmatmul.mubr.msk.bf16.vlgmr.msra.gmra.mrb[60].mxu0 %vm592_vm3, %v2140_v26 }
 0x7c1   : > { %v2135_v11 = vsel %vm592_vm3, %v3033_v7, 0.0  ;;  %v2141_v47 = vpack.c.bf16 %v3033_v7, %v3029_v13 }
 0x7c2   : > { %642 = vadd.xlane.f32.xlu1 %v641_v28 }
 0x7c3   : > { %2136 = vadd.xlane.f32.xlu0 %v2135_v11  ;;  %2919 = vmatmul.mubr.msk.bf16.vlgmr.msra.gmra.mrb[68].mxu1 %vm592_vm3, %v2141_v47 }
 0x7c6   : > { %648 = vadd.xlane.f32.xlu1 %v647_v39 }
 0x7c7   : > { %645 = vadd.xlane.f32.xlu0 %v644_v63 }
 0x7ca   : > { %654 = vadd.xlane.f32.xlu1 %v653_v8 }
 0x7cb   : > { %651 = vadd.xlane.f32.xlu0 %v650_v31 }
 0x7ce   : > { %660 = vadd.xlane.f32.xlu1 %v659_v4 }
 0x7cf   : > { %657 = vadd.xlane.f32.xlu0 %v656_v36 }
 0x7d3   : > { %663 = vadd.xlane.f32.xlu0 %v662_v32 }
 0x7e6   : > { %v1137_v6 = vpop.xlane.xlu1 %1136  ;;  %v1134_v56 = vpop.xlane.xlu0 %1133 }
 0x7e7   : > { %3034 = vrcp.f32 %v1137_v6 }
 0x7e8   : > { %3036 = vrcp.f32 %v1134_v56 }
 0x7ea   : > { %v1625_v38 = vpop.xlane.xlu1 %1624  ;;  %v1140_v27 = vpop.xlane.xlu0 %1139 }
 0x7eb   : > { %3038 = vrcp.f32 %v1140_v27 }
 0x7ee   : > { %v1631_v37 = vpop.xlane.xlu1 %1630  ;;  %v1143_v2 = vpop.xlane.xlu0 %1142 }
 0x7ef   : > { %3040 = vrcp.f32 %v1143_v2 }
 0x7f0   : > { %3042 = vrcp.f32 %v1625_v38 }
 0x7f1   : > { %v3035_v55 = vpop.eup %3034 }
 0x7f2   : > { %v3037_v25 = vpop.eup %3036  ;;  %v1146_v23 = vpop.xlane.xlu1 %1145  ;;  %v1357_v19 = vmul.f32 %v3035_v55, %v3446_v22 }
 0x7f3   : > { %v1628_v35 = vpop.xlane.xlu0 %1627  ;;  %v1356_v57 = vmul.f32 %v3037_v25, %v3444_v16 }
 0x7f4   : > { %3044 = vrcp.f32 %v1628_v35 }
 0x7f5   : > { %v1364_v24 = vpack.c.bf16 %v1357_v19, %v1356_v57  ;;  %3046 = vrcp.f32 %v1631_v37  ;;  %v3039_v48 = vpop.eup %3038 }
 0x7f6   : > { %v1152_v21 = vpop.xlane.xlu1 %1151  ;;  %v1358_v61 = vmul.f32 %v3039_v48, %v3448_v29 }
 0x7f7   : > { %v1634_v52 = vpop.xlane.xlu0 %1633  ;;  %2354 = vrot.lane.b32.xlu1 %v1364_v24, %s3119_s15 }
 0x7f8   : > { %3048 = vrcp.f32 %v1634_v52 }
 0x7f9   : > { %v3041_v58 = vpop.eup %3040  ;;  %3050 = vrcp.f32 %v1146_v23 }
 0x7fa   : > { %v1359_v33 = vmul.f32 %v3041_v58, %v3450_v17  ;;  %v3043_v22 = vpop.eup %3042  ;;  %v1637_v10 = vpop.xlane.xlu1 %1636 }
 0x7fb   : > { %v1149_v49 = vpop.xlane.xlu0 %1148  ;;  %v1847_v34 = vmul.f32 %v3043_v22, %v3543_v0  ;;  %v3821_v22 = vld [vmem:[#allocation3_spill] sm:$0xff] }
 0x7fc   : > { %3052 = vrcp.f32 %v1149_v49  ;;  %v1365_v16 = vpack.c.bf16 %v1359_v33, %v1358_v61 }
 0x7fd   : > { %3054 = vrcp.f32 %v1152_v21 }
 0x7fe   : > { %v3045_v51 = vpop.eup %3044  ;;  %2356 = vrot.lane.b32.xlu0 %v1365_v16, %s3119_s15  ;;  %v1643_v54 = vpop.xlane.xlu1 %1642 }
 0x7ff   : > { %v1155_v12 = vpop.xlane.xlu0 %1154  ;;  %v1848_v59 = vmul.f32 %v3045_v51, %v3545_v9  ;;  %v3047_v14 = vpop.eup %3046 }
 0x800   : > { %3056 = vrcp.f32 %v1155_v12  ;;  %v1849_v30 = vmul.f32 %v3047_v14, %v3547_v45  ;;  %v3822_v12 = vld [vmem:[#allocation2_spill] sm:$0xff] }
 0x801   : > { %3058 = vrcp.f32 %v1637_v10  ;;  %v1855_v18 = vpack.c.bf16 %v1848_v59, %v1847_v34  ;;  %v3823_v34 = vld [vmem:[#allocation4_spill] sm:$0xff] }
 0x802   : > { %v3049_v29 = vpop.eup %3048 }
 0x803   : > { %v1640_v17 = vpop.xlane.xlu0 %1639  ;;  %2366 = vrot.lane.b32.xlu1 %v1855_v18, %s3120_s16  ;;  %v1850_v13 = vmul.f32 %v3049_v29, %v3549_v46  ;;  %v3051_v42 = vpop.eup %3050  ;;  %v3824_v29 = vld [vmem:[#allocation5_spill] sm:$0xff] }
 0x804   : > { %3060 = vrcp.f32 %v1640_v17  ;;  %v1360_v60 = vmul.f32 %v3051_v42, %v3452_v20  ;;  %v3825_v17 = vld [vmem:[#allocation6_spill] sm:$0xff]  ;;  %v2969_v42 = vld [vmem:[%s3809_s3 + $0x8] sm:$0xff]  }
 0x805   : > { %3062 = vrcp.f32 %v1643_v54  ;;  %v1856_v0 = vpack.c.bf16 %v1850_v13, %v1849_v30 }
 0x806   : > { %v3053_v15 = vpop.eup %3052 }
 0x807   : > { %v1646_v9 = vpop.xlane.xlu0 %1645  ;;  %2368 = vrot.lane.b32.xlu1 %v1856_v0, %s3120_s16  ;;  %v1361_v26 = vmul.f32 %v3053_v15, %v3454_v41  ;;  %v3055_v7 = vpop.eup %3054 }
 0x808   : > { %3064 = vrcp.f32 %v1646_v9  ;;  %v1362_v45 = vmul.f32 %v3055_v7, %v3456_v43 }
 0x809   : > { %v1366_v28 = vpack.c.bf16 %v1361_v26, %v1360_v60 }
 0x80a   : > { %v3057_v11 = vpop.eup %3056 }
 0x80b   : > { %v3059_v47 = vpop.eup %3058  ;;  %2358 = vrot.lane.b32.xlu0 %v1366_v28, %s3119_s15  ;;  %v1363_v46 = vmul.f32 %v3057_v11, %v3458_v44 }
 0x80c   : > { %v3694_v8 = vmul.f32 %v3059_v47, %v3551_v40  ;;  %v2968_v40 = vld [vmem:[%s3809_s3] sm:$0xff]  }
 0x80d   : > { %v1367_v63 = vpack.c.bf16 %v1363_v46, %v1362_v45  ;;  %2922 = vmatprep.subr.bf16.mxu0 %v2968_v40 }
 0x80e   : > { %v3061_v39 = vpop.eup %3060  ;;  %2923 = vmatpush3.bf16.msra.mxu0 %v2968_v40 }
 0x80f   : > { %v3697_v31 = vmul.f32 %v3061_v39, %v3553_v50  ;;  %v3063_v20 = vpop.eup %3062  ;;  %2360 = vrot.lane.b32.xlu1 %v1367_v63, %s3119_s15  ;;  %2924 = vmatprep.subr.bf16.mxu0 %v2969_v42 }
 0x810   : > { %v3703_v36 = vmul.f32 %v3063_v20, %v3555_v53 }
 0x811   : > { %v1857_v41 = vpack.c.bf16 %v3697_v31, %v3694_v8 }
 0x812   : > { %v3065_v4 = vpop.eup %3064  ;;  %2925 = vmatpush3.bf16.msra.mxu0 %v2969_v42 }
 0x813   : > { %v3706_v43 = vmul.f32 %v3065_v4, %v3557_v62 }
 0x815   : > { %v1858_v44 = vpack.c.bf16 %v3706_v43, %v3703_v36 }
 0x83e   : > { %v2116_v50 = vpop.xlane.xlu1 %2115 }
 0x840   : > { %v2119_v32 = vpop.xlane.xlu0 %2118 }
 0x843   : > { %v2122_v6 = vpop.xlane.xlu1 %2121 }
 0x847   : > { %v2128_v56 = vpop.xlane.xlu1 %2127  ;;  %v2125_v38 = vpop.xlane.xlu0 %2124 }
 0x84b   : > { %v2134_v27 = vpop.xlane.xlu1 %2133 }
 0x84c   : > { %v2131_v53 = vpop.xlane.xlu0 %2130 }
 0x84f   : > { %v643_v37 = vpop.xlane.xlu1 %642 }
 0x850   : > { %v2137_v2 = vpop.xlane.xlu0 %2136  ;;  %3066 = vrcp.f32 %v643_v37 }
 0x853   : > { %v649_v62 = vpop.xlane.xlu1 %648 }
 0x854   : > { %v646_v55 = vpop.xlane.xlu0 %645 }
 0x855   : > { %3068 = vrcp.f32 %v646_v55 }
 0x856   : > { %3070 = vrcp.f32 %v649_v62 }
 0x857   : > { %v655_v25 = vpop.xlane.xlu1 %654 }
 0x858   : > { %v652_v23 = vpop.xlane.xlu0 %651 }
 0x859   : > { %3072 = vrcp.f32 %v652_v23 }
 0x85a   : > { %3074 = vrcp.f32 %v655_v25  ;;  %v3067_v57 = vpop.eup %3066 }
 0x85b   : > { %v661_v35 = vpop.xlane.xlu1 %660  ;;  %v3714_v52 = vmul.f32 %v3067_v57, %v3334_v1 }
 0x85c   : > { %v658_v19 = vpop.xlane.xlu0 %657 }
 0x85d   : > { %3076 = vrcp.f32 %v658_v19 }
 0x85e   : > { %3078 = vrcp.f32 %v661_v35 }
 0x85f   : > { %v3069_v24 = vpop.eup %3068 }
 0x860   : > { %v664_v21 = vpop.xlane.xlu0 %663  ;;  %v3717_v48 = vmul.f32 %v3069_v24, %v3336_v3  ;;  %v3071_v58 = vpop.eup %3070 }
 0x861   : > { %3080 = vrcp.f32 %v664_v21  ;;  %v3722_v33 = vmul.f32 %v3071_v58, %v3338_v5 }
 0x862   : > { %v873_v49 = vpack.c.bf16 %v3717_v48, %v3714_v52  ;;  %3082 = vrcp.f32 %v2116_v50 }
 0x863   : > { %v3073_v61 = vpop.eup %3072  ;;  %3084 = vrcp.f32 %v2119_v32 }
 0x864   : > { %v3725_v10 = vmul.f32 %v3073_v61, %v3821_v22  ;;  %v3075_v16 = vpop.eup %3074  ;;  %3086 = vrcp.f32 %v2122_v6 }
 0x865   : > { %v3730_v3 = vmul.f32 %v3075_v16, %v3822_v12  ;;  %3088 = vrcp.f32 %v2125_v38 }
 0x866   : > { %v874_v1 = vpack.c.bf16 %v3725_v10, %v3722_v33  ;;  %3090 = vrcp.f32 %v2128_v56 }
 0x867   : > { %v3077_v51 = vpop.eup %3076  ;;  %3092 = vrcp.f32 %v2131_v53 }
 0x868   : > { %v3733_v59 = vmul.f32 %v3077_v51, %v3823_v34  ;;  %v3079_v14 = vpop.eup %3078  ;;  %3094 = vrcp.f32 %v2134_v27 }
 0x869   : > { %v3738_v54 = vmul.f32 %v3079_v14, %v3824_v29  ;;  %3096 = vrcp.f32 %v2137_v2  ;;  %v2355_v21 = vpop.permute.xlu1 %2354 }
 0x86a   : > { %v875_v18 = vpack.c.bf16 %v3733_v59, %v3730_v3  ;;  %v2388_v16 = vsel %vm394_vm2, %v873_v49, %v2355_v21  ;;  %v2633_v59 = vld [vmem:[%s3810_s4] ss:$0 sm:$0xff] }
 0x86b   : > { %v3081_v5 = vpop.eup %3080 }
 0x86c   : > { %v3741_v30 = vmul.f32 %v3081_v5, %v3825_v17  ;;  %v3083_v15 = vpop.eup %3082 }
 0x86d   : > { %v3085_v60 = vpop.eup %3084 }
 0x86e   : > { %v876_v13 = vpack.c.bf16 %v3741_v30, %v3738_v54  ;;  %v3087_v46 = vpop.eup %3086 }
 0x86f   : > { %v3089_v63 = vpop.eup %3088 }
 0x870   : > { %v3091_v56 = vpop.eup %3090  ;;  %v2357_v58 = vpop.permute.xlu0 %2356 }
 0x871   : > { %v3093_v27 = vpop.eup %3092  ;;  %v2391_v34 = vsel %vm394_vm2, %v874_v1, %v2357_v58 }
 0x872   : > { %v3095_v25 = vpop.eup %3094 }
 0x873   : > { %v3097_v35 = vpop.eup %3096 }
 0x875   : > { %v2367_v61 = vpop.permute.xlu1 %2366 }
 0x876   : > { %v2399_v12 = vsel %vm592_vm3, %v2388_v16, %v2367_v61 }
 0x879   : > { %v2369_v51 = vpop.permute.xlu1 %2368 }
 0x87a   : > { %v2401_v14 = vsel %vm592_vm3, %v2391_v34, %v2369_v51 }
 0x87d   : > { %v2359_v22 = vpop.permute.xlu0 %2358 }
 0x87e   : > { %v2394_v5 = vsel %vm394_vm2, %v875_v18, %v2359_v22 }
 0x887   : > { %v2182_v0 = vpop.f32.mrb[56].mxu0 }
 0x888   : > { %v2902_v9 = vpop.f32.mrb[57].mxu0  ;;  %v2338_v7 = vmul.f32 %v3083_v15, %v2182_v0 }
 0x889   : > { %v2185_v26 = vpop.f32.mrb[58].mxu0 }
 0x88a   : > { %v2339_v28 = vmul.f32 %v3085_v60, %v2185_v26  ;;  %v2903_v11 = vpop.f32.mrb[59].mxu0 }
 0x88c   : > { %v2346_v47 = vpack.c.bf16 %v2339_v28, %v2338_v7 }
 0x88e   : > { %v2229_v45 = vpop.f32.mrb[64].mxu1  ;;  %2378 = vrot.lane.b32.xlu0 %v2346_v47, %s3121_s22 }
 0x88f   : > { %v2908_v39 = vpop.f32.mrb[65].mxu1  ;;  %v2340_v4 = vmul.f32 %v3087_v46, %v2229_v45 }
 0x890   : > { %v2232_v20 = vpop.f32.mrb[66].mxu1 }
 0x891   : > { %v2341_v40 = vmul.f32 %v3089_v63, %v2232_v20  ;;  %v2909_v50 = vpop.f32.mrb[67].mxu1 }
 0x892   : > { %2370 = vrot.lane.b32.xlu0 %v1857_v41, %s3120_s16 }
 0x893   : > { %v2347_v32 = vpack.c.bf16 %v2341_v40, %v2340_v4  ;;  %v2276_v6 = vpop.f32.mrb[60].mxu0 }
 0x894   : > { %v2914_v38 = vpop.f32.mrb[61].mxu0  ;;  %v2342_v37 = vmul.f32 %v3091_v56, %v2276_v6 }
 0x895   : > { %v2279_v53 = vpop.f32.mrb[62].mxu0  ;;  %2380 = vrot.lane.b32.xlu1 %v2347_v32, %s3121_s22 }
 0x896   : > { %v2343_v2 = vmul.f32 %v3093_v27, %v2279_v53  ;;  %v2915_v62 = vpop.f32.mrb[63].mxu0  ;;  %v2323_v55 = vpop.f32.mrb[68].mxu1 }
 0x897   : > { %v2920_v23 = vpop.f32.mrb[69].mxu1  ;;  %v2344_v24 = vmul.f32 %v3095_v25, %v2323_v55 }
 0x898   : > { %v2348_v19 = vpack.c.bf16 %v2343_v2, %v2342_v37  ;;  %v2326_v57 = vpop.f32.mrb[70].mxu1 }
 0x899   : > { %v2345_v8 = vmul.f32 %v3097_v35, %v2326_v57  ;;  %v2921_v31 = vpop.f32.mrb[71].mxu1  ;;  %2372 = vrot.lane.b32.xlu1 %v1858_v44, %s3120_s16  ;;  %v2361_v44 = vpop.permute.xlu1 %2360 }
 0x89a   : > { %2382 = vrot.lane.b32.xlu0 %v2348_v19, %s3121_s22  ;;  %v2397_v1 = vsel %vm394_vm2, %v876_v13, %v2361_v44 }
 0x89b   : > { %v2349_v41 = vpack.c.bf16 %v2345_v8, %v2344_v24 }
 0x89d   : > { %2384 = vrot.lane.b32.xlu1 %v2349_v41, %s3121_s22 }
 0x900   : > { %v2379_v36 = vpop.permute.xlu0 %2378 }
 0x901   : > { %v2408_v43 = vsel %vm2406_vm4, %v2399_v12, %v2379_v36 }
 0x902   : > { %2926 = vmatprep.mubr.msk.bf16.mxu0 %vm307_vm0, %v2408_v43 }
 0x904   : > { %v2371_v48 = vpop.permute.xlu0 %2370 }
 0x905   : > { %v2403_v17 = vsel %vm592_vm3, %v2394_v5, %v2371_v48 }
 0x907   : > { %v2381_v52 = vpop.permute.xlu1 %2380 }
 0x908   : > { %v2410_v49 = vsel %vm2406_vm4, %v2401_v14, %v2381_v52 }
 0x909   : > { %2927 = vmatmul.mubr.msk.bf16.vlgmr.msra.gmra.mrb[64].mxu0 %vm307_vm0, %v2410_v49 }
 0x90b   : > { %v2373_v29 = vpop.permute.xlu1 %2372 }
 0x90c   : > { %v2383_v33 = vpop.permute.xlu0 %2382  ;;  %v2405_v42 = vsel %vm592_vm3, %v2397_v1, %v2373_v29 }
 0x90d   : > { %v2412_v10 = vsel %vm2406_vm4, %v2403_v17, %v2383_v33 }
 0x90e   : > { %2930 = vmatprep.mubr.msk.bf16.mxu0 %vm307_vm0, %v2412_v10 }
 0x90f   : > { %v2385_v0 = vpop.permute.xlu1 %2384 }
 0x910   : > { %v2414_v3 = vsel %vm2406_vm4, %v2405_v42, %v2385_v0 }
 0x911   : > { %2931 = vmatmul.mubr.msk.bf16.gmra.mrb[68].mxu0 %vm307_vm0, %v2414_v3 }
 0x9dc   : > { %v2928_v18 = vpop.f32.mrb[64].mxu0 }
 0x9dd   : > { %v2489_v54 = vadd.f32 %v2928_v18, %v2633_v59  ;;  %v2480_v30 = vpop.f32.mrb[65].mxu0 }
 0x9de   : > { %v2481_v13 = vadd.f32 %v2633_v59, %v2480_v30  ;;  %v2929_v15 = vpop.f32.mrb[66].mxu0 }
 0x9df   : > { %2513 = vst.msk [vmem:[%s253_s29 + $0x10] sm:$0xff] %vm307_vm0, %v2489_v54  ;;  %v2492_v9 = vadd.f32 %v2929_v15, %v2633_v59  ;;  %v2483_v60 = vpop.f32.mrb[67].mxu0 }
 0x9e0   : > { %2511 = vst.msk [vmem:[%s253_s29] sm:$0xff] %vm307_vm0, %v2481_v13  ;;  %v2484_v26 = vadd.f32 %v2633_v59, %v2483_v60 }
 0x9e1   : > { %2514 = vst.msk [vmem:[%s253_s29 + $0x18] sm:$0xff] %vm307_vm0, %v2492_v9 }
 0x9e2   : > { %2512 = vst.msk [vmem:[%s253_s29 + $0x8] sm:$0xff] %vm307_vm0, %v2484_v26 }
 0x9e4   : > { %v2932_v7 = vpop.f32.mrb[68].mxu0 }
 0x9e5   : > { %v2505_v28 = vadd.f32 %v2932_v7, %v2633_v59  ;;  %v2496_v11 = vpop.f32.mrb[69].mxu0 }
 0x9e6   : > { %v2497_v47 = vadd.f32 %v2633_v59, %v2496_v11  ;;  %v2933_v45 = vpop.f32.mrb[70].mxu0 }
 0x9e7   : > { %2517 = vst.msk [vmem:[%s253_s29 + $0x30] sm:$0xff] %vm307_vm0, %v2505_v28  ;;  %v2508_v46 = vadd.f32 %v2933_v45, %v2633_v59  ;;  %v2499_v39 = vpop.f32.mrb[71].mxu0 }
 0x9e8   : > { %2515 = vst.msk [vmem:[%s253_s29 + $0x20] sm:$0xff] %vm307_vm0, %v2497_v47  ;;  %v2500_v63 = vadd.f32 %v2633_v59, %v2499_v39 }
 0x9e9   : > { %2518 = vst.msk [vmem:[%s253_s29 + $0x38] sm:$0xff] %vm307_vm0, %v2508_v46 }
 0x9ea   : > { %2516 = vst.msk [vmem:[%s253_s29 + $0x28] sm:$0xff] %vm307_vm0, %v2500_v63 }
 0x9eb PF: > { %s16_s21 = sadd.s32 1, %s3104_s21  }
 0x9ec   : > { %p13_p4 = scmp.ge.s32.totalorder %s16_s21, 4  }
 0x9ee   :  { %15 = sbr.rel (!%p13_p4) target bundleno = 1 (0x1), region = 77 }

</bundles_post_ra>
